<compile_context>
chip_gen: v7x
topology: tpu7x:2x2x1
jax: 0.10.0
libtpu: 0.0.40
codegen_flags: <defaults>
</compile_context>

<pallas_src>
from functools import partial

import jax
import jax.numpy as jnp
from jax import lax
from jax.experimental import pallas as pl
from jax.experimental.pallas import tpu as pltpu

N_OUT = 2  # fc = Linear(hidden, 2), fixed by the module


# ---------------------------------------------------------------------------
# Fused kernel: conv(as matmul)+ReLU -> 2-layer LSTM -> Linear(hidden, 2)
# ---------------------------------------------------------------------------
def cnn_lstm_fused_kernel(patches_ref, hc_ref, wA_ref, wB_ref, out_ref, *, T):
    # patches_ref: (KKP, B*HW)  im2col taps (rows 0:9C, order (ky,kx,c)),
    #              row 9C = ones (conv bias tap), rest zero pad;
    #              columns ordered (b, h, w).
    # hc_ref:      (4, B, HID)  rows: h_layer0, h_layer1, c_layer0, c_layer1
    # wA_ref:      packed f32 slab, lane width 8*HID:
    #              rows [0:HW,        0:4H ] = Wih0
    #              rows [HW:HW+2H,    :    ] = Wbig = [[Wih1, Whh0], [Whh1, 0]]
    #              row  [HW+2H,       :    ] = [b0 | b1]   (combined LSTM biases)
    # wB_ref:      packed f32 slab, lane width KKP:
    #              rows [0:T, :]                 = [Wconv (T,9C) | bconv | 0]
    #              rows [fc_row:fc_row+HID, :]   = [Wfc (HID,2)  | 0]
    #              row  [fc_row+HID, :]          = [bfc (1,2)    | 0]
    # out_ref:     (B, 2)
    B = hc_ref.shape[1]
    HID = hc_ref.shape[2]
    G4 = 4 * HID
    BHW = patches_ref.shape[1]
    HW = BHW // B
    fc_row = ((T + 7) // 8) * 8

    # ---- conv (+bias via augmented ones row) as one lane-dense matmul + ReLU ----
    wc = wB_ref[0:T, :]                                     # (T, KKP)
    r = jnp.maximum(
        jnp.dot(wc, patches_ref[...], preferred_element_type=jnp.float32), 0.0)

    # ---- layer-0 input projection for ALL timesteps: ONE matmul, hoisted ----
    w_ih0 = wA_ref[0:HW, 0:G4]                              # (HW, 4H)
    b0 = wA_ref[HW + 2 * HID:HW + 2 * HID + 1, 0:G4]        # (1, 4H)
    b1 = wA_ref[HW + 2 * HID:HW + 2 * HID + 1, G4:2 * G4]   # (1, 4H)
    # rows ordered (t, b) so xg(t) is a contiguous static 2-row slice below
    x_all = jnp.concatenate(
        [r[t:t + 1, b * HW:(b + 1) * HW] for t in range(T) for b in range(B)],
        axis=0)                                             # (T*B, HW)
    proj = jnp.dot(x_all, w_ih0, preferred_element_type=jnp.float32) + b0
    xgs = [proj[t * B:(t + 1) * B, :] for t in range(T)]    # (B, 4H) each, hoisted

    w_big = wA_ref[HW:HW + 2 * HID, 0:2 * G4]               # [[Wih1,Whh0],[Whh1,0]]

    # ---- single-tanh gate nonlinearity: sigmoid(x) = 0.5*(1 + tanh(x/2)) ----
    lane = lax.broadcasted_iota(jnp.int32, (B, G4), 1)
    is_g = (lane >= 2 * HID) & (lane < 3 * HID)

    def gate_act(gates):                                    # gates: (B, 4H)
        y = jnp.where(is_g, gates, 0.5 * gates)
        th = jnp.tanh(y)
        return jnp.where(is_g, th, 0.5 * th + 0.5)

    def apply_gates(act, c_prev):
        i = act[:, 0:HID]
        f = act[:, HID:2 * HID]
        g = act[:, 2 * HID:3 * HID]
        o = act[:, 3 * HID:4 * HID]
        c_new = f * c_prev + i * g
        return o * jnp.tanh(c_new), c_new

    h0 = hc_ref[0]
    h1 = hc_ref[1]
    c0 = hc_ref[2]
    c1 = hc_ref[3]

    # prologue: layer-0 recurrent term for t=0 (only lanes 4H:8H are used)
    rec0 = jnp.dot(jnp.concatenate([h0, h1], axis=-1), w_big,
                   preferred_element_type=jnp.float32)[:, G4:2 * G4]

    # ---- fully unrolled recurrence: ONE fused MXU matmul per timestep ----
    for t in range(T):
        # layer 0: no matmul left on the serial path
        h0, c0 = apply_gates(gate_act(xgs[t] + rec0), c0)
        # fused: [h0(t), h1(t-1)] @ [[Wih1, Whh0], [Whh1, 0]]
        #   lanes 0:4H  -> layer-1 pre-gates for step t
        #   lanes 4H:8H -> h0(t) @ Whh0 = layer-0 recurrent term for step t+1
        res = jnp.dot(jnp.concatenate([h0, h1], axis=-1), w_big,
                      preferred_element_type=jnp.float32)   # (B, 8H)
        h1, c1 = apply_gates(gate_act(res[:, 0:G4] + b1), c1)
        rec0 = res[:, G4:2 * G4]

    # ---- fc(dropout(h_last)) with eval-mode dropout == identity ----
    fc_w = wB_ref[fc_row:fc_row + HID, :]                   # (HID, KKP), cols 0:2 real
    fc_b = wB_ref[fc_row + HID:fc_row + HID + 1, :]
    y = jnp.dot(h1, fc_w, preferred_element_type=jnp.float32) + fc_b
    out_ref[...] = y[:, 0:out_ref.shape[1]]


# ---------------------------------------------------------------------------
# One-time weight packing into two slabs (4 DMAs/call instead of 12)
# ---------------------------------------------------------------------------
def prepare_kernel_params(params):
    kh, kw, C, T = params["conv_w"].shape
    HW = params["wih0"].shape[0]
    HID = params["whh0"].shape[0]
    G4 = 4 * HID
    n_out = params["wfc"].shape[1]
    kk = kh * kw * C + 1                       # 9C filter taps + 1 bias tap
    kkp = ((kk + 7) // 8) * 8
    fc_row = ((T + 7) // 8) * 8
    f32 = jnp.float32

    # slab A (lane width 8H): Wih0 | Wbig=[[Wih1,Whh0],[Whh1,0]] | [b0|b1]
    rows_a = ((HW + 2 * HID + 1 + 7) // 8) * 8
    wA = jnp.zeros((rows_a, 2 * G4), f32)
    wA = wA.at[0:HW, 0:G4].set(params["wih0"])
    wA = wA.at[HW:HW + HID, 0:G4].set(params["wih1"])
    wA = wA.at[HW:HW + HID, G4:2 * G4].set(params["whh0"])
    wA = wA.at[HW + HID:HW + 2 * HID, 0:G4].set(params["whh1"])
    wA = wA.at[HW + 2 * HID, 0:G4].set(params["b0"][0])
    wA = wA.at[HW + 2 * HID, G4:2 * G4].set(params["b1"][0])

    # slab B (lane width kkp): conv weight rows (+bias column), fc weight + bias
    rows_b = ((fc_row + HID + 1 + 7) // 8) * 8
    wB = jnp.zeros((rows_b, kkp), f32)
    wc_t = jnp.transpose(params["conv_w"].reshape(kh * kw * C, T))     # (T, 9C)
    wB = wB.at[0:T, 0:kk - 1].set(wc_t)
    wB = wB.at[0:T, kk - 1].set(params["conv_b"])
    wB = wB.at[fc_row:fc_row + HID, 0:n_out].set(params["wfc"])
    wB = wB.at[fc_row + HID, 0:n_out].set(params["bfc"][0])
    return {"wA": wA, "wB": wB}


# ---------------------------------------------------------------------------
# Wrapper: tiny im2col glue + single pallas_call
# ---------------------------------------------------------------------------
@partial(jax.jit, static_argnames=("timesteps",))
def cnn_lstm_forward(x_nchw, kparams, hidden, *, timesteps):
    h_init, c_init = hidden
    B, C, Hs, Ws = x_nchw.shape
    HW = Hs * Ws
    T = timesteps
    kk = 9 * C + 1
    kkp = ((kk + 7) // 8) * 8

    # im2col patch matrix (kkp, B*HW), columns ordered (b, h, w).  Transposing
    # the input to (C,B,H,W) up front lets the stack+reshape fold without a
    # post-stack transpose; the conv-bias ones row is appended here.
    # TODO(synk): move this 3x3 gather fully in-kernel (needs an in-VMEM
    # (C,B,Hp,Wp) -> (9C, B*H*W) relayout); kept as small XLA glue for
    # lowering robustness.
    x_cbhw = jnp.transpose(x_nchw, (1, 0, 2, 3))
    xp = jnp.pad(x_cbhw, ((0, 0), (0, 0), (1, 1), (1, 1)))
    shifts = [xp[:, :, i:i + Hs, j:j + Ws] for i in range(3) for j in range(3)]
    patches = jnp.stack(shifts, axis=0).reshape(9 * C, B * HW)
    patches = jnp.concatenate(
        [patches, jnp.ones((1, B * HW), jnp.float32),
         jnp.zeros((kkp - kk, B * HW), jnp.float32)], axis=0)           # (kkp, B*HW)

    # hidden/cell state packed into one input: rows h_l0, h_l1, c_l0, c_l1
    hc = jnp.concatenate([h_init, c_init], axis=0)                      # (4, B, HID)
    HID = hc.shape[-1]

    wA, wB = kparams["wA"], kparams["wB"]
    flops = (2 * T * kkp * B * HW                         # conv matmul
             + 2 * T * B * HW * 4 * HID                   # layer-0 input projection
             + (T + 1) * 2 * B * (2 * HID) * (8 * HID)    # fused recurrence matmuls
             + 2 * B * HID * kkp)                         # fc
    transcendentals = T * (2 * B * 4 * HID + 2 * B * HID)
    bytes_accessed = (patches.size + hc.size + wA.size + wB.size + B * N_OUT) * 4

    vmem = pl.BlockSpec(memory_space=pltpu.MemorySpace.VMEM)
    return pl.pallas_call(
        partial(cnn_lstm_fused_kernel, T=T),
        out_shape=jax.ShapeDtypeStruct((B, N_OUT), jnp.float32),
        in_specs=[vmem] * 4,
        out_specs=vmem,
        cost_estimate=pl.CostEstimate(flops=flops,
                                      transcendentals=transcendentals,
                                      bytes_accessed=bytes_accessed),
    )(patches, hc, wA, wB)


# ---------------------------------------------------------------------------
# Pure-JAX reference for validation
# ---------------------------------------------------------------------------
def reference_forward(x_nchw, params, hidden):
    h_init, c_init = hidden
    x_nhwc = jnp.transpose(x_nchw, (0, 2, 3, 1))
    enc = lax.conv_general_dilated(
        x_nhwc, params["conv_w"], window_strides=(1, 1), padding="SAME",
        dimension_numbers=("NHWC", "HWIO", "NHWC"))
    enc = jnp.maximum(enc + params["conv_b"], 0.0)
    B, Hs, Ws, T = enc.shape
    r_in = jnp.transpose(enc, (0, 3, 1, 2)).reshape(B, T, Hs * Ws)
    x_tbd = jnp.transpose(r_in, (1, 0, 2))

    def layer(x_seq, h0, c0, wih, whh, b):
        def step(carry, x_t):
            h, c = carry
            gates = x_t @ wih + h @ whh + b
            i, f, g, o = jnp.split(gates, 4, axis=-1)
            i = jax.nn.sigmoid(i)
            f = jax.nn.sigmoid(f)
            g = jnp.tanh(g)
            o = jax.nn.sigmoid(o)
            c = f * c + i * g
            h = o * jnp.tanh(c)
            return (h, c), h
        (h, c), hs = lax.scan(step, (h0, c0), x_seq)
        return hs, h

    hs0, _ = layer(x_tbd, h_init[0], c_init[0],
                   params["wih0"], params["whh0"], params["b0"][0])
    _, h_last = layer(hs0, h_init[1], c_init[1],
                      params["wih1"], params["whh1"], params["b1"][0])
    return h_last @ params["wfc"] + params["bfc"]


# ---------------------------------------------------------------------------
if __name__ == "__main__":
    # Small shapes: batch=2, in-channels=4, spatial=8x8, timesteps=6,
    # LSTM input_size = 8*8 = 64, hidden_size = 32, num_layers = 2.
    B, C_in, SP, T_STEPS = 2, 4, 8, 6
    D_IN, HID, NUM_LAYERS = SP * SP, 32, 2

    key = jax.random.PRNGKey(0)
    keys = jax.random.split(key, 12)
    s = 0.1  # deterministic small-scale init

    params = {
        "conv_w": s * jax.random.normal(keys[0], (3, 3, C_in, T_STEPS), jnp.float32),
        "conv_b": s * jax.random.normal(keys[1], (T_STEPS,), jnp.float32),
        # LSTM weights, pre-transposed (in_dim, 4*HID), gate order i,f,g,o;
        # b* holds the combined (b_ih + b_hh) bias as a (1, 4*HID) row.
        "wih0": s * jax.random.normal(keys[2], (D_IN, 4 * HID), jnp.float32),
        "whh0": s * jax.random.normal(keys[3], (HID, 4 * HID), jnp.float32),
        "b0":   s * jax.random.normal(keys[4], (1, 4 * HID), jnp.float32),
        "wih1": s * jax.random.normal(keys[5], (HID, 4 * HID), jnp.float32),
        "whh1": s * jax.random.normal(keys[6], (HID, 4 * HID), jnp.float32),
        "b1":   s * jax.random.normal(keys[7], (1, 4 * HID), jnp.float32),
        "wfc":  s * jax.random.normal(keys[8], (HID, 2), jnp.float32),
        "bfc":  s * jax.random.normal(keys[9], (1, 2), jnp.float32),
    }

    x = jax.random.normal(keys[10], (B, C_in, SP, SP), jnp.float32)  # NCHW input
    # init_hidden(batch_size): zeros of shape (num_layers, B, hidden)
    h0 = jnp.zeros((NUM_LAYERS, B, HID), jnp.float32)
    c0 = jnp.zeros((NUM_LAYERS, B, HID), jnp.float32)

    kparams = prepare_kernel_params(params)
    out = cnn_lstm_forward(x, kparams, (h0, c0), timesteps=T_STEPS)
    out = jax.block_until_ready(out)

    ref = jax.block_until_ready(reference_forward(x, params, (h0, c0)))
    assert out.shape == (B, 2)
    assert jnp.allclose(out, ref, rtol=1e-4, atol=1e-4), (out, ref)

    print("KERNEL_OK")
</pallas_src>

<mosaic_0001>
module attributes {stable_mosaic.version = 11 : i64} {
  func.func @cnn_lstm_fused_kernel(%arg0: memref<40x128xf32, #tpu.memory_space<vmem>>, %arg1: memref<4x2x32xf32, #tpu.memory_space<vmem>>, %arg2: memref<136x256xf32, #tpu.memory_space<vmem>>, %arg3: memref<48x40xf32, #tpu.memory_space<vmem>>, %arg4: memref<2x2xf32, #tpu.memory_space<vmem>>) attributes {dimension_semantics = [], scalar_prefetch = 0 : i64, scratch_operands = 0 : i64, tpu.core_type = #tpu.core_type<tc>} {
    %c0 = arith.constant 0 : index
    %c0_0 = arith.constant 0 : index
    %0 = vector.load %arg3[%c0, %c0_0] : memref<48x40xf32, #tpu.memory_space<vmem>>, vector<6x40xf32>
    %c0_1 = arith.constant 0 : index
    %c0_2 = arith.constant 0 : index
    %1 = vector.load %arg0[%c0_1, %c0_2] : memref<40x128xf32, #tpu.memory_space<vmem>>, vector<40x128xf32>
    %cst = arith.constant dense<0.000000e+00> : vector<6x128xf32>
    %2 = tpu.matmul %0, %1, %cst {dimension_numbers = #tpu.dot_dimension_numbers<[1], [0], [0], [1], [0, 0, 1, 1], [], []>} : vector<6x40xf32>, vector<40x128xf32>, vector<6x128xf32> -> vector<6x128xf32>
    %cst_3 = arith.constant 0.000000e+00 : f32
    %3 = vector.broadcast %cst_3 : f32 to vector<6x128xf32>
    %4 = arith.maximumf %2, %3 : vector<6x128xf32>
    %c0_4 = arith.constant 0 : index
    %c0_5 = arith.constant 0 : index
    %5 = vector.load %arg2[%c0_4, %c0_5] : memref<136x256xf32, #tpu.memory_space<vmem>>, vector<64x128xf32>
    %c128 = arith.constant 128 : index
    %c0_6 = arith.constant 0 : index
    %6 = vector.load %arg2[%c128, %c0_6] : memref<136x256xf32, #tpu.memory_space<vmem>>, vector<1x128xf32>
    %c128_7 = arith.constant 128 : index
    %c128_8 = arith.constant 128 : index
    %7 = vector.load %arg2[%c128_7, %c128_8] : memref<136x256xf32, #tpu.memory_space<vmem>>, vector<1x128xf32>
    %8 = vector.extract_strided_slice %4 {offsets = [0, 0], sizes = [1, 64], strides = [1, 1]} : vector<6x128xf32> to vector<1x64xf32>
    %9 = vector.extract_strided_slice %4 {offsets = [0, 64], sizes = [1, 64], strides = [1, 1]} : vector<6x128xf32> to vector<1x64xf32>
    %10 = vector.extract_strided_slice %4 {offsets = [1, 0], sizes = [1, 64], strides = [1, 1]} : vector<6x128xf32> to vector<1x64xf32>
    %11 = vector.extract_strided_slice %4 {offsets = [1, 64], sizes = [1, 64], strides = [1, 1]} : vector<6x128xf32> to vector<1x64xf32>
    %12 = vector.extract_strided_slice %4 {offsets = [2, 0], sizes = [1, 64], strides = [1, 1]} : vector<6x128xf32> to vector<1x64xf32>
    %13 = vector.extract_strided_slice %4 {offsets = [2, 64], sizes = [1, 64], strides = [1, 1]} : vector<6x128xf32> to vector<1x64xf32>
    %14 = vector.extract_strided_slice %4 {offsets = [3, 0], sizes = [1, 64], strides = [1, 1]} : vector<6x128xf32> to vector<1x64xf32>
    %15 = vector.extract_strided_slice %4 {offsets = [3, 64], sizes = [1, 64], strides = [1, 1]} : vector<6x128xf32> to vector<1x64xf32>
    %16 = vector.extract_strided_slice %4 {offsets = [4, 0], sizes = [1, 64], strides = [1, 1]} : vector<6x128xf32> to vector<1x64xf32>
    %17 = vector.extract_strided_slice %4 {offsets = [4, 64], sizes = [1, 64], strides = [1, 1]} : vector<6x128xf32> to vector<1x64xf32>
    %18 = vector.extract_strided_slice %4 {offsets = [5, 0], sizes = [1, 64], strides = [1, 1]} : vector<6x128xf32> to vector<1x64xf32>
    %19 = vector.extract_strided_slice %4 {offsets = [5, 64], sizes = [1, 64], strides = [1, 1]} : vector<6x128xf32> to vector<1x64xf32>
    %20 = tpu.concatenate %8, %9, %10, %11, %12, %13, %14, %15, %16, %17, %18, %19 in 0 : vector<1x64xf32>, vector<1x64xf32>, vector<1x64xf32>, vector<1x64xf32>, vector<1x64xf32>, vector<1x64xf32>, vector<1x64xf32>, vector<1x64xf32>, vector<1x64xf32>, vector<1x64xf32>, vector<1x64xf32>, vector<1x64xf32> -> vector<12x64xf32>
    %cst_9 = arith.constant dense<0.000000e+00> : vector<12x128xf32>
    %21 = tpu.matmul %20, %5, %cst_9 {dimension_numbers = #tpu.dot_dimension_numbers<[1], [0], [0], [1], [0, 0, 1, 1], [], []>} : vector<12x64xf32>, vector<64x128xf32>, vector<12x128xf32> -> vector<12x128xf32>
    %22 = vector.broadcast %6 : vector<1x128xf32> to vector<12x128xf32>
    %23 = arith.addf %21, %22 : vector<12x128xf32>
    %24 = vector.extract_strided_slice %23 {offsets = [0, 0], sizes = [2, 128], strides = [1, 1]} : vector<12x128xf32> to vector<2x128xf32>
    %25 = vector.extract_strided_slice %23 {offsets = [2, 0], sizes = [2, 128], strides = [1, 1]} : vector<12x128xf32> to vector<2x128xf32>
    %26 = vector.extract_strided_slice %23 {offsets = [4, 0], sizes = [2, 128], strides = [1, 1]} : vector<12x128xf32> to vector<2x128xf32>
    %27 = vector.extract_strided_slice %23 {offsets = [6, 0], sizes = [2, 128], strides = [1, 1]} : vector<12x128xf32> to vector<2x128xf32>
    %28 = vector.extract_strided_slice %23 {offsets = [8, 0], sizes = [2, 128], strides = [1, 1]} : vector<12x128xf32> to vector<2x128xf32>
    %29 = vector.extract_strided_slice %23 {offsets = [10, 0], sizes = [2, 128], strides = [1, 1]} : vector<12x128xf32> to vector<2x128xf32>
    %c64 = arith.constant 64 : index
    %c0_10 = arith.constant 0 : index
    %30 = vector.load %arg2[%c64, %c0_10] : memref<136x256xf32, #tpu.memory_space<vmem>>, vector<64x256xf32>
    %31 = tpu.iota {dimensions = array<i32: 1>} : vector<2x128xi32>
    %c64_i32 = arith.constant 64 : i32
    %32 = vector.broadcast %c64_i32 : i32 to vector<2x128xi32>
    %33 = arith.cmpi sge, %31, %32 : vector<2x128xi32>
    %c96_i32 = arith.constant 96 : i32
    %34 = vector.broadcast %c96_i32 : i32 to vector<2x128xi32>
    %35 = arith.cmpi slt, %31, %34 : vector<2x128xi32>
    %36 = arith.andi %33, %35 : vector<2x128xi1>
    %c0_11 = arith.constant 0 : index
    %c0_12 = arith.constant 0 : index
    %c0_13 = arith.constant 0 : index
    %37 = vector.load %arg1[%c0_11, %c0_12, %c0_13] : memref<4x2x32xf32, #tpu.memory_space<vmem>>, vector<1x2x32xf32>
    %38 = vector.shape_cast %37 : vector<1x2x32xf32> to vector<2x32xf32>
    %c1 = arith.constant 1 : index
    %c0_14 = arith.constant 0 : index
    %c0_15 = arith.constant 0 : index
    %39 = vector.load %arg1[%c1, %c0_14, %c0_15] : memref<4x2x32xf32, #tpu.memory_space<vmem>>, vector<1x2x32xf32>
    %40 = vector.shape_cast %39 : vector<1x2x32xf32> to vector<2x32xf32>
    %c2 = arith.constant 2 : index
    %c0_16 = arith.constant 0 : index
    %c0_17 = arith.constant 0 : index
    %41 = vector.load %arg1[%c2, %c0_16, %c0_17] : memref<4x2x32xf32, #tpu.memory_space<vmem>>, vector<1x2x32xf32>
    %42 = vector.shape_cast %41 : vector<1x2x32xf32> to vector<2x32xf32>
    %c3 = arith.constant 3 : index
    %c0_18 = arith.constant 0 : index
    %c0_19 = arith.constant 0 : index
    %43 = vector.load %arg1[%c3, %c0_18, %c0_19] : memref<4x2x32xf32, #tpu.memory_space<vmem>>, vector<1x2x32xf32>
    %44 = vector.shape_cast %43 : vector<1x2x32xf32> to vector<2x32xf32>
    %45 = tpu.concatenate %38, %40 in 1 : vector<2x32xf32>, vector<2x32xf32> -> vector<2x64xf32>
    %cst_20 = arith.constant dense<0.000000e+00> : vector<2x256xf32>
    %46 = tpu.matmul %45, %30, %cst_20 {dimension_numbers = #tpu.dot_dimension_numbers<[1], [0], [0], [1], [0, 0, 1, 1], [], []>} : vector<2x64xf32>, vector<64x256xf32>, vector<2x256xf32> -> vector<2x256xf32>
    %47 = vector.extract_strided_slice %46 {offsets = [0, 128], sizes = [2, 128], strides = [1, 1]} : vector<2x256xf32> to vector<2x128xf32>
    %48 = arith.addf %24, %47 : vector<2x128xf32>
    %cst_21 = arith.constant 5.000000e-01 : f32
    %49 = vector.broadcast %cst_21 : f32 to vector<2x128xf32>
    %50 = arith.mulf %49, %48 : vector<2x128xf32>
    %51 = arith.select %36, %48, %50 : vector<2x128xi1>, vector<2x128xf32>
    %52 = math.tanh %51 : vector<2x128xf32>
    %cst_22 = arith.constant 5.000000e-01 : f32
    %53 = vector.broadcast %cst_22 : f32 to vector<2x128xf32>
    %54 = arith.mulf %53, %52 : vector<2x128xf32>
    %cst_23 = arith.constant 5.000000e-01 : f32
    %55 = vector.broadcast %cst_23 : f32 to vector<2x128xf32>
    %56 = arith.addf %54, %55 : vector<2x128xf32>
    %57 = arith.select %36, %52, %56 : vector<2x128xi1>, vector<2x128xf32>
    %58 = vector.extract_strided_slice %57 {offsets = [0, 0], sizes = [2, 32], strides = [1, 1]} : vector<2x128xf32> to vector<2x32xf32>
    %59 = vector.extract_strided_slice %57 {offsets = [0, 32], sizes = [2, 32], strides = [1, 1]} : vector<2x128xf32> to vector<2x32xf32>
    %60 = vector.extract_strided_slice %57 {offsets = [0, 64], sizes = [2, 32], strides = [1, 1]} : vector<2x128xf32> to vector<2x32xf32>
    %61 = vector.extract_strided_slice %57 {offsets = [0, 96], sizes = [2, 32], strides = [1, 1]} : vector<2x128xf32> to vector<2x32xf32>
    %62 = arith.mulf %59, %42 : vector<2x32xf32>
    %63 = arith.mulf %58, %60 : vector<2x32xf32>
    %64 = arith.addf %62, %63 : vector<2x32xf32>
    %65 = math.tanh %64 : vector<2x32xf32>
    %66 = arith.mulf %61, %65 : vector<2x32xf32>
    %67 = tpu.concatenate %66, %40 in 1 : vector<2x32xf32>, vector<2x32xf32> -> vector<2x64xf32>
    %cst_24 = arith.constant dense<0.000000e+00> : vector<2x256xf32>
    %68 = tpu.matmul %67, %30, %cst_24 {dimension_numbers = #tpu.dot_dimension_numbers<[1], [0], [0], [1], [0, 0, 1, 1], [], []>} : vector<2x64xf32>, vector<64x256xf32>, vector<2x256xf32> -> vector<2x256xf32>
    %69 = vector.extract_strided_slice %68 {offsets = [0, 0], sizes = [2, 128], strides = [1, 1]} : vector<2x256xf32> to vector<2x128xf32>
    %70 = vector.broadcast %7 : vector<1x128xf32> to vector<2x128xf32>
    %71 = arith.addf %69, %70 : vector<2x128xf32>
    %cst_25 = arith.constant 5.000000e-01 : f32
    %72 = vector.broadcast %cst_25 : f32 to vector<2x128xf32>
    %73 = arith.mulf %72, %71 : vector<2x128xf32>
    %74 = arith.select %36, %71, %73 : vector<2x128xi1>, vector<2x128xf32>
    %75 = math.tanh %74 : vector<2x128xf32>
    %cst_26 = arith.constant 5.000000e-01 : f32
    %76 = vector.broadcast %cst_26 : f32 to vector<2x128xf32>
    %77 = arith.mulf %76, %75 : vector<2x128xf32>
    %cst_27 = arith.constant 5.000000e-01 : f32
    %78 = vector.broadcast %cst_27 : f32 to vector<2x128xf32>
    %79 = arith.addf %77, %78 : vector<2x128xf32>
    %80 = arith.select %36, %75, %79 : vector<2x128xi1>, vector<2x128xf32>
    %81 = vector.extract_strided_slice %80 {offsets = [0, 0], sizes = [2, 32], strides = [1, 1]} : vector<2x128xf32> to vector<2x32xf32>
    %82 = vector.extract_strided_slice %80 {offsets = [0, 32], sizes = [2, 32], strides = [1, 1]} : vector<2x128xf32> to vector<2x32xf32>
    %83 = vector.extract_strided_slice %80 {offsets = [0, 64], sizes = [2, 32], strides = [1, 1]} : vector<2x128xf32> to vector<2x32xf32>
    %84 = vector.extract_strided_slice %80 {offsets = [0, 96], sizes = [2, 32], strides = [1, 1]} : vector<2x128xf32> to vector<2x32xf32>
    %85 = arith.mulf %82, %44 : vector<2x32xf32>
    %86 = arith.mulf %81, %83 : vector<2x32xf32>
    %87 = arith.addf %85, %86 : vector<2x32xf32>
    %88 = math.tanh %87 : vector<2x32xf32>
    %89 = arith.mulf %84, %88 : vector<2x32xf32>
    %90 = vector.extract_strided_slice %68 {offsets = [0, 128], sizes = [2, 128], strides = [1, 1]} : vector<2x256xf32> to vector<2x128xf32>
    %91 = arith.addf %25, %90 : vector<2x128xf32>
    %cst_28 = arith.constant 5.000000e-01 : f32
    %92 = vector.broadcast %cst_28 : f32 to vector<2x128xf32>
    %93 = arith.mulf %92, %91 : vector<2x128xf32>
    %94 = arith.select %36, %91, %93 : vector<2x128xi1>, vector<2x128xf32>
    %95 = math.tanh %94 : vector<2x128xf32>
    %cst_29 = arith.constant 5.000000e-01 : f32
    %96 = vector.broadcast %cst_29 : f32 to vector<2x128xf32>
    %97 = arith.mulf %96, %95 : vector<2x128xf32>
    %cst_30 = arith.constant 5.000000e-01 : f32
    %98 = vector.broadcast %cst_30 : f32 to vector<2x128xf32>
    %99 = arith.addf %97, %98 : vector<2x128xf32>
    %100 = arith.select %36, %95, %99 : vector<2x128xi1>, vector<2x128xf32>
    %101 = vector.extract_strided_slice %100 {offsets = [0, 0], sizes = [2, 32], strides = [1, 1]} : vector<2x128xf32> to vector<2x32xf32>
    %102 = vector.extract_strided_slice %100 {offsets = [0, 32], sizes = [2, 32], strides = [1, 1]} : vector<2x128xf32> to vector<2x32xf32>
    %103 = vector.extract_strided_slice %100 {offsets = [0, 64], sizes = [2, 32], strides = [1, 1]} : vector<2x128xf32> to vector<2x32xf32>
    %104 = vector.extract_strided_slice %100 {offsets = [0, 96], sizes = [2, 32], strides = [1, 1]} : vector<2x128xf32> to vector<2x32xf32>
    %105 = arith.mulf %102, %64 : vector<2x32xf32>
    %106 = arith.mulf %101, %103 : vector<2x32xf32>
    %107 = arith.addf %105, %106 : vector<2x32xf32>
    %108 = math.tanh %107 : vector<2x32xf32>
    %109 = arith.mulf %104, %108 : vector<2x32xf32>
    %110 = tpu.concatenate %109, %89 in 1 : vector<2x32xf32>, vector<2x32xf32> -> vector<2x64xf32>
    %cst_31 = arith.constant dense<0.000000e+00> : vector<2x256xf32>
    %111 = tpu.matmul %110, %30, %cst_31 {dimension_numbers = #tpu.dot_dimension_numbers<[1], [0], [0], [1], [0, 0, 1, 1], [], []>} : vector<2x64xf32>, vector<64x256xf32>, vector<2x256xf32> -> vector<2x256xf32>
    %112 = vector.extract_strided_slice %111 {offsets = [0, 0], sizes = [2, 128], strides = [1, 1]} : vector<2x256xf32> to vector<2x128xf32>
    %113 = vector.broadcast %7 : vector<1x128xf32> to vector<2x128xf32>
    %114 = arith.addf %112, %113 : vector<2x128xf32>
    %cst_32 = arith.constant 5.000000e-01 : f32
    %115 = vector.broadcast %cst_32 : f32 to vector<2x128xf32>
    %116 = arith.mulf %115, %114 : vector<2x128xf32>
    %117 = arith.select %36, %114, %116 : vector<2x128xi1>, vector<2x128xf32>
    %118 = math.tanh %117 : vector<2x128xf32>
    %cst_33 = arith.constant 5.000000e-01 : f32
    %119 = vector.broadcast %cst_33 : f32 to vector<2x128xf32>
    %120 = arith.mulf %119, %118 : vector<2x128xf32>
    %cst_34 = arith.constant 5.000000e-01 : f32
    %121 = vector.broadcast %cst_34 : f32 to vector<2x128xf32>
    %122 = arith.addf %120, %121 : vector<2x128xf32>
    %123 = arith.select %36, %118, %122 : vector<2x128xi1>, vector<2x128xf32>
    %124 = vector.extract_strided_slice %123 {offsets = [0, 0], sizes = [2, 32], strides = [1, 1]} : vector<2x128xf32> to vector<2x32xf32>
    %125 = vector.extract_strided_slice %123 {offsets = [0, 32], sizes = [2, 32], strides = [1, 1]} : vector<2x128xf32> to vector<2x32xf32>
    %126 = vector.extract_strided_slice %123 {offsets = [0, 64], sizes = [2, 32], strides = [1, 1]} : vector<2x128xf32> to vector<2x32xf32>
    %127 = vector.extract_strided_slice %123 {offsets = [0, 96], sizes = [2, 32], strides = [1, 1]} : vector<2x128xf32> to vector<2x32xf32>
    %128 = arith.mulf %125, %87 : vector<2x32xf32>
    %129 = arith.mulf %124, %126 : vector<2x32xf32>
    %130 = arith.addf %128, %129 : vector<2x32xf32>
    %131 = math.tanh %130 : vector<2x32xf32>
    %132 = arith.mulf %127, %131 : vector<2x32xf32>
    %133 = vector.extract_strided_slice %111 {offsets = [0, 128], sizes = [2, 128], strides = [1, 1]} : vector<2x256xf32> to vector<2x128xf32>
    %134 = arith.addf %26, %133 : vector<2x128xf32>
    %cst_35 = arith.constant 5.000000e-01 : f32
    %135 = vector.broadcast %cst_35 : f32 to vector<2x128xf32>
    %136 = arith.mulf %135, %134 : vector<2x128xf32>
    %137 = arith.select %36, %134, %136 : vector<2x128xi1>, vector<2x128xf32>
    %138 = math.tanh %137 : vector<2x128xf32>
    %cst_36 = arith.constant 5.000000e-01 : f32
    %139 = vector.broadcast %cst_36 : f32 to vector<2x128xf32>
    %140 = arith.mulf %139, %138 : vector<2x128xf32>
    %cst_37 = arith.constant 5.000000e-01 : f32
    %141 = vector.broadcast %cst_37 : f32 to vector<2x128xf32>
    %142 = arith.addf %140, %141 : vector<2x128xf32>
    %143 = arith.select %36, %138, %142 : vector<2x128xi1>, vector<2x128xf32>
    %144 = vector.extract_strided_slice %143 {offsets = [0, 0], sizes = [2, 32], strides = [1, 1]} : vector<2x128xf32> to vector<2x32xf32>
    %145 = vector.extract_strided_slice %143 {offsets = [0, 32], sizes = [2, 32], strides = [1, 1]} : vector<2x128xf32> to vector<2x32xf32>
    %146 = vector.extract_strided_slice %143 {offsets = [0, 64], sizes = [2, 32], strides = [1, 1]} : vector<2x128xf32> to vector<2x32xf32>
    %147 = vector.extract_strided_slice %143 {offsets = [0, 96], sizes = [2, 32], strides = [1, 1]} : vector<2x128xf32> to vector<2x32xf32>
    %148 = arith.mulf %145, %107 : vector<2x32xf32>
    %149 = arith.mulf %144, %146 : vector<2x32xf32>
    %150 = arith.addf %148, %149 : vector<2x32xf32>
    %151 = math.tanh %150 : vector<2x32xf32>
    %152 = arith.mulf %147, %151 : vector<2x32xf32>
    %153 = tpu.concatenate %152, %132 in 1 : vector<2x32xf32>, vector<2x32xf32> -> vector<2x64xf32>
    %cst_38 = arith.constant dense<0.000000e+00> : vector<2x256xf32>
    %154 = tpu.matmul %153, %30, %cst_38 {dimension_numbers = #tpu.dot_dimension_numbers<[1], [0], [0], [1], [0, 0, 1, 1], [], []>} : vector<2x64xf32>, vector<64x256xf32>, vector<2x256xf32> -> vector<2x256xf32>
    %155 = vector.extract_strided_slice %154 {offsets = [0, 0], sizes = [2, 128], strides = [1, 1]} : vector<2x256xf32> to vector<2x128xf32>
    %156 = vector.broadcast %7 : vector<1x128xf32> to vector<2x128xf32>
    %157 = arith.addf %155, %156 : vector<2x128xf32>
    %cst_39 = arith.constant 5.000000e-01 : f32
    %158 = vector.broadcast %cst_39 : f32 to vector<2x128xf32>
    %159 = arith.mulf %158, %157 : vector<2x128xf32>
    %160 = arith.select %36, %157, %159 : vector<2x128xi1>, vector<2x128xf32>
    %161 = math.tanh %160 : vector<2x128xf32>
    %cst_40 = arith.constant 5.000000e-01 : f32
    %162 = vector.broadcast %cst_40 : f32 to vector<2x128xf32>
    %163 = arith.mulf %162, %161 : vector<2x128xf32>
    %cst_41 = arith.constant 5.000000e-01 : f32
    %164 = vector.broadcast %cst_41 : f32 to vector<2x128xf32>
    %165 = arith.addf %163, %164 : vector<2x128xf32>
    %166 = arith.select %36, %161, %165 : vector<2x128xi1>, vector<2x128xf32>
    %167 = vector.extract_strided_slice %166 {offsets = [0, 0], sizes = [2, 32], strides = [1, 1]} : vector<2x128xf32> to vector<2x32xf32>
    %168 = vector.extract_strided_slice %166 {offsets = [0, 32], sizes = [2, 32], strides = [1, 1]} : vector<2x128xf32> to vector<2x32xf32>
    %169 = vector.extract_strided_slice %166 {offsets = [0, 64], sizes = [2, 32], strides = [1, 1]} : vector<2x128xf32> to vector<2x32xf32>
    %170 = vector.extract_strided_slice %166 {offsets = [0, 96], sizes = [2, 32], strides = [1, 1]} : vector<2x128xf32> to vector<2x32xf32>
    %171 = arith.mulf %168, %130 : vector<2x32xf32>
    %172 = arith.mulf %167, %169 : vector<2x32xf32>
    %173 = arith.addf %171, %172 : vector<2x32xf32>
    %174 = math.tanh %173 : vector<2x32xf32>
    %175 = arith.mulf %170, %174 : vector<2x32xf32>
    %176 = vector.extract_strided_slice %154 {offsets = [0, 128], sizes = [2, 128], strides = [1, 1]} : vector<2x256xf32> to vector<2x128xf32>
    %177 = arith.addf %27, %176 : vector<2x128xf32>
    %cst_42 = arith.constant 5.000000e-01 : f32
    %178 = vector.broadcast %cst_42 : f32 to vector<2x128xf32>
    %179 = arith.mulf %178, %177 : vector<2x128xf32>
    %180 = arith.select %36, %177, %179 : vector<2x128xi1>, vector<2x128xf32>
    %181 = math.tanh %180 : vector<2x128xf32>
    %cst_43 = arith.constant 5.000000e-01 : f32
    %182 = vector.broadcast %cst_43 : f32 to vector<2x128xf32>
    %183 = arith.mulf %182, %181 : vector<2x128xf32>
    %cst_44 = arith.constant 5.000000e-01 : f32
    %184 = vector.broadcast %cst_44 : f32 to vector<2x128xf32>
    %185 = arith.addf %183, %184 : vector<2x128xf32>
    %186 = arith.select %36, %181, %185 : vector<2x128xi1>, vector<2x128xf32>
    %187 = vector.extract_strided_slice %186 {offsets = [0, 0], sizes = [2, 32], strides = [1, 1]} : vector<2x128xf32> to vector<2x32xf32>
    %188 = vector.extract_strided_slice %186 {offsets = [0, 32], sizes = [2, 32], strides = [1, 1]} : vector<2x128xf32> to vector<2x32xf32>
    %189 = vector.extract_strided_slice %186 {offsets = [0, 64], sizes = [2, 32], strides = [1, 1]} : vector<2x128xf32> to vector<2x32xf32>
    %190 = vector.extract_strided_slice %186 {offsets = [0, 96], sizes = [2, 32], strides = [1, 1]} : vector<2x128xf32> to vector<2x32xf32>
    %191 = arith.mulf %188, %150 : vector<2x32xf32>
    %192 = arith.mulf %187, %189 : vector<2x32xf32>
    %193 = arith.addf %191, %192 : vector<2x32xf32>
    %194 = math.tanh %193 : vector<2x32xf32>
    %195 = arith.mulf %190, %194 : vector<2x32xf32>
    %196 = tpu.concatenate %195, %175 in 1 : vector<2x32xf32>, vector<2x32xf32> -> vector<2x64xf32>
    %cst_45 = arith.constant dense<0.000000e+00> : vector<2x256xf32>
    %197 = tpu.matmul %196, %30, %cst_45 {dimension_numbers = #tpu.dot_dimension_numbers<[1], [0], [0], [1], [0, 0, 1, 1], [], []>} : vector<2x64xf32>, vector<64x256xf32>, vector<2x256xf32> -> vector<2x256xf32>
    %198 = vector.extract_strided_slice %197 {offsets = [0, 0], sizes = [2, 128], strides = [1, 1]} : vector<2x256xf32> to vector<2x128xf32>
    %199 = vector.broadcast %7 : vector<1x128xf32> to vector<2x128xf32>
    %200 = arith.addf %198, %199 : vector<2x128xf32>
    %cst_46 = arith.constant 5.000000e-01 : f32
    %201 = vector.broadcast %cst_46 : f32 to vector<2x128xf32>
    %202 = arith.mulf %201, %200 : vector<2x128xf32>
    %203 = arith.select %36, %200, %202 : vector<2x128xi1>, vector<2x128xf32>
    %204 = math.tanh %203 : vector<2x128xf32>
    %cst_47 = arith.constant 5.000000e-01 : f32
    %205 = vector.broadcast %cst_47 : f32 to vector<2x128xf32>
    %206 = arith.mulf %205, %204 : vector<2x128xf32>
    %cst_48 = arith.constant 5.000000e-01 : f32
    %207 = vector.broadcast %cst_48 : f32 to vector<2x128xf32>
    %208 = arith.addf %206, %207 : vector<2x128xf32>
    %209 = arith.select %36, %204, %208 : vector<2x128xi1>, vector<2x128xf32>
    %210 = vector.extract_strided_slice %209 {offsets = [0, 0], sizes = [2, 32], strides = [1, 1]} : vector<2x128xf32> to vector<2x32xf32>
    %211 = vector.extract_strided_slice %209 {offsets = [0, 32], sizes = [2, 32], strides = [1, 1]} : vector<2x128xf32> to vector<2x32xf32>
    %212 = vector.extract_strided_slice %209 {offsets = [0, 64], sizes = [2, 32], strides = [1, 1]} : vector<2x128xf32> to vector<2x32xf32>
    %213 = vector.extract_strided_slice %209 {offsets = [0, 96], sizes = [2, 32], strides = [1, 1]} : vector<2x128xf32> to vector<2x32xf32>
    %214 = arith.mulf %211, %173 : vector<2x32xf32>
    %215 = arith.mulf %210, %212 : vector<2x32xf32>
    %216 = arith.addf %214, %215 : vector<2x32xf32>
    %217 = math.tanh %216 : vector<2x32xf32>
    %218 = arith.mulf %213, %217 : vector<2x32xf32>
    %219 = vector.extract_strided_slice %197 {offsets = [0, 128], sizes = [2, 128], strides = [1, 1]} : vector<2x256xf32> to vector<2x128xf32>
    %220 = arith.addf %28, %219 : vector<2x128xf32>
    %cst_49 = arith.constant 5.000000e-01 : f32
    %221 = vector.broadcast %cst_49 : f32 to vector<2x128xf32>
    %222 = arith.mulf %221, %220 : vector<2x128xf32>
    %223 = arith.select %36, %220, %222 : vector<2x128xi1>, vector<2x128xf32>
    %224 = math.tanh %223 : vector<2x128xf32>
    %cst_50 = arith.constant 5.000000e-01 : f32
    %225 = vector.broadcast %cst_50 : f32 to vector<2x128xf32>
    %226 = arith.mulf %225, %224 : vector<2x128xf32>
    %cst_51 = arith.constant 5.000000e-01 : f32
    %227 = vector.broadcast %cst_51 : f32 to vector<2x128xf32>
    %228 = arith.addf %226, %227 : vector<2x128xf32>
    %229 = arith.select %36, %224, %228 : vector<2x128xi1>, vector<2x128xf32>
    %230 = vector.extract_strided_slice %229 {offsets = [0, 0], sizes = [2, 32], strides = [1, 1]} : vector<2x128xf32> to vector<2x32xf32>
    %231 = vector.extract_strided_slice %229 {offsets = [0, 32], sizes = [2, 32], strides = [1, 1]} : vector<2x128xf32> to vector<2x32xf32>
    %232 = vector.extract_strided_slice %229 {offsets = [0, 64], sizes = [2, 32], strides = [1, 1]} : vector<2x128xf32> to vector<2x32xf32>
    %233 = vector.extract_strided_slice %229 {offsets = [0, 96], sizes = [2, 32], strides = [1, 1]} : vector<2x128xf32> to vector<2x32xf32>
    %234 = arith.mulf %231, %193 : vector<2x32xf32>
    %235 = arith.mulf %230, %232 : vector<2x32xf32>
    %236 = arith.addf %234, %235 : vector<2x32xf32>
    %237 = math.tanh %236 : vector<2x32xf32>
    %238 = arith.mulf %233, %237 : vector<2x32xf32>
    %239 = tpu.concatenate %238, %218 in 1 : vector<2x32xf32>, vector<2x32xf32> -> vector<2x64xf32>
    %cst_52 = arith.constant dense<0.000000e+00> : vector<2x256xf32>
    %240 = tpu.matmul %239, %30, %cst_52 {dimension_numbers = #tpu.dot_dimension_numbers<[1], [0], [0], [1], [0, 0, 1, 1], [], []>} : vector<2x64xf32>, vector<64x256xf32>, vector<2x256xf32> -> vector<2x256xf32>
    %241 = vector.extract_strided_slice %240 {offsets = [0, 0], sizes = [2, 128], strides = [1, 1]} : vector<2x256xf32> to vector<2x128xf32>
    %242 = vector.broadcast %7 : vector<1x128xf32> to vector<2x128xf32>
    %243 = arith.addf %241, %242 : vector<2x128xf32>
    %cst_53 = arith.constant 5.000000e-01 : f32
    %244 = vector.broadcast %cst_53 : f32 to vector<2x128xf32>
    %245 = arith.mulf %244, %243 : vector<2x128xf32>
    %246 = arith.select %36, %243, %245 : vector<2x128xi1>, vector<2x128xf32>
    %247 = math.tanh %246 : vector<2x128xf32>
    %cst_54 = arith.constant 5.000000e-01 : f32
    %248 = vector.broadcast %cst_54 : f32 to vector<2x128xf32>
    %249 = arith.mulf %248, %247 : vector<2x128xf32>
    %cst_55 = arith.constant 5.000000e-01 : f32
    %250 = vector.broadcast %cst_55 : f32 to vector<2x128xf32>
    %251 = arith.addf %249, %250 : vector<2x128xf32>
    %252 = arith.select %36, %247, %251 : vector<2x128xi1>, vector<2x128xf32>
    %253 = vector.extract_strided_slice %252 {offsets = [0, 0], sizes = [2, 32], strides = [1, 1]} : vector<2x128xf32> to vector<2x32xf32>
    %254 = vector.extract_strided_slice %252 {offsets = [0, 32], sizes = [2, 32], strides = [1, 1]} : vector<2x128xf32> to vector<2x32xf32>
    %255 = vector.extract_strided_slice %252 {offsets = [0, 64], sizes = [2, 32], strides = [1, 1]} : vector<2x128xf32> to vector<2x32xf32>
    %256 = vector.extract_strided_slice %252 {offsets = [0, 96], sizes = [2, 32], strides = [1, 1]} : vector<2x128xf32> to vector<2x32xf32>
    %257 = arith.mulf %254, %216 : vector<2x32xf32>
    %258 = arith.mulf %253, %255 : vector<2x32xf32>
    %259 = arith.addf %257, %258 : vector<2x32xf32>
    %260 = math.tanh %259 : vector<2x32xf32>
    %261 = arith.mulf %256, %260 : vector<2x32xf32>
    %262 = vector.extract_strided_slice %240 {offsets = [0, 128], sizes = [2, 128], strides = [1, 1]} : vector<2x256xf32> to vector<2x128xf32>
    %263 = arith.addf %29, %262 : vector<2x128xf32>
    %cst_56 = arith.constant 5.000000e-01 : f32
    %264 = vector.broadcast %cst_56 : f32 to vector<2x128xf32>
    %265 = arith.mulf %264, %263 : vector<2x128xf32>
    %266 = arith.select %36, %263, %265 : vector<2x128xi1>, vector<2x128xf32>
    %267 = math.tanh %266 : vector<2x128xf32>
    %cst_57 = arith.constant 5.000000e-01 : f32
    %268 = vector.broadcast %cst_57 : f32 to vector<2x128xf32>
    %269 = arith.mulf %268, %267 : vector<2x128xf32>
    %cst_58 = arith.constant 5.000000e-01 : f32
    %270 = vector.broadcast %cst_58 : f32 to vector<2x128xf32>
    %271 = arith.addf %269, %270 : vector<2x128xf32>
    %272 = arith.select %36, %267, %271 : vector<2x128xi1>, vector<2x128xf32>
    %273 = vector.extract_strided_slice %272 {offsets = [0, 0], sizes = [2, 32], strides = [1, 1]} : vector<2x128xf32> to vector<2x32xf32>
    %274 = vector.extract_strided_slice %272 {offsets = [0, 32], sizes = [2, 32], strides = [1, 1]} : vector<2x128xf32> to vector<2x32xf32>
    %275 = vector.extract_strided_slice %272 {offsets = [0, 64], sizes = [2, 32], strides = [1, 1]} : vector<2x128xf32> to vector<2x32xf32>
    %276 = vector.extract_strided_slice %272 {offsets = [0, 96], sizes = [2, 32], strides = [1, 1]} : vector<2x128xf32> to vector<2x32xf32>
    %277 = arith.mulf %274, %236 : vector<2x32xf32>
    %278 = arith.mulf %273, %275 : vector<2x32xf32>
    %279 = arith.addf %277, %278 : vector<2x32xf32>
    %280 = math.tanh %279 : vector<2x32xf32>
    %281 = arith.mulf %276, %280 : vector<2x32xf32>
    %282 = tpu.concatenate %281, %261 in 1 : vector<2x32xf32>, vector<2x32xf32> -> vector<2x64xf32>
    %cst_59 = arith.constant dense<0.000000e+00> : vector<2x256xf32>
    %283 = tpu.matmul %282, %30, %cst_59 {dimension_numbers = #tpu.dot_dimension_numbers<[1], [0], [0], [1], [0, 0, 1, 1], [], []>} : vector<2x64xf32>, vector<64x256xf32>, vector<2x256xf32> -> vector<2x256xf32>
    %284 = vector.extract_strided_slice %283 {offsets = [0, 0], sizes = [2, 128], strides = [1, 1]} : vector<2x256xf32> to vector<2x128xf32>
    %285 = vector.broadcast %7 : vector<1x128xf32> to vector<2x128xf32>
    %286 = arith.addf %284, %285 : vector<2x128xf32>
    %cst_60 = arith.constant 5.000000e-01 : f32
    %287 = vector.broadcast %cst_60 : f32 to vector<2x128xf32>
    %288 = arith.mulf %287, %286 : vector<2x128xf32>
    %289 = arith.select %36, %286, %288 : vector<2x128xi1>, vector<2x128xf32>
    %290 = math.tanh %289 : vector<2x128xf32>
    %cst_61 = arith.constant 5.000000e-01 : f32
    %291 = vector.broadcast %cst_61 : f32 to vector<2x128xf32>
    %292 = arith.mulf %291, %290 : vector<2x128xf32>
    %cst_62 = arith.constant 5.000000e-01 : f32
    %293 = vector.broadcast %cst_62 : f32 to vector<2x128xf32>
    %294 = arith.addf %292, %293 : vector<2x128xf32>
    %295 = arith.select %36, %290, %294 : vector<2x128xi1>, vector<2x128xf32>
    %296 = vector.extract_strided_slice %295 {offsets = [0, 0], sizes = [2, 32], strides = [1, 1]} : vector<2x128xf32> to vector<2x32xf32>
    %297 = vector.extract_strided_slice %295 {offsets = [0, 32], sizes = [2, 32], strides = [1, 1]} : vector<2x128xf32> to vector<2x32xf32>
    %298 = vector.extract_strided_slice %295 {offsets = [0, 64], sizes = [2, 32], strides = [1, 1]} : vector<2x128xf32> to vector<2x32xf32>
    %299 = vector.extract_strided_slice %295 {offsets = [0, 96], sizes = [2, 32], strides = [1, 1]} : vector<2x128xf32> to vector<2x32xf32>
    %300 = arith.mulf %297, %259 : vector<2x32xf32>
    %301 = arith.mulf %296, %298 : vector<2x32xf32>
    %302 = arith.addf %300, %301 : vector<2x32xf32>
    %303 = math.tanh %302 : vector<2x32xf32>
    %304 = arith.mulf %299, %303 : vector<2x32xf32>
    %c8 = arith.constant 8 : index
    %c0_63 = arith.constant 0 : index
    %305 = vector.load %arg3[%c8, %c0_63] : memref<48x40xf32, #tpu.memory_space<vmem>>, vector<32x40xf32>
    %c40 = arith.constant 40 : index
    %c0_64 = arith.constant 0 : index
    %306 = vector.load %arg3[%c40, %c0_64] : memref<48x40xf32, #tpu.memory_space<vmem>>, vector<1x40xf32>
    %cst_65 = arith.constant dense<0.000000e+00> : vector<2x40xf32>
    %307 = tpu.matmul %304, %305, %cst_65 {dimension_numbers = #tpu.dot_dimension_numbers<[1], [0], [0], [1], [0, 0, 1, 1], [], []>} : vector<2x32xf32>, vector<32x40xf32>, vector<2x40xf32> -> vector<2x40xf32>
    %308 = vector.broadcast %306 : vector<1x40xf32> to vector<2x40xf32>
    %309 = arith.addf %307, %308 : vector<2x40xf32>
    %310 = vector.extract_strided_slice %309 {offsets = [0, 0], sizes = [2, 2], strides = [1, 1]} : vector<2x40xf32> to vector<2x2xf32>
    %c0_66 = arith.constant 0 : index
    %c0_67 = arith.constant 0 : index
    %311 = vector.load %arg4[%c0_66, %c0_67] : memref<2x2xf32, #tpu.memory_space<vmem>>, vector<2x2xf32>
    tpu.vector_store %arg4[%c0_66, %c0_67], %310 {strides = array<i32>} : memref<2x2xf32, #tpu.memory_space<vmem>>, vector<2x2xf32>,
    return
  }
}

</mosaic_0001>

<bundles_post_ra>
// kernel: cnn_lstm_forward.1
= control target key start
LH: loop header
LB: loop body
LE: loop exit
PB: predicated region body
PF: predicated region fallthrough
CT: control target
= control target key end

     0   :  { %v1566_v3 = vmov 0.0|0.0   ;;  %vm1567_vm0 = vmmov 0   ;;  %v1568_v6 = vmov 0.0   ;;  %s1966_s0 = inlined_call_operand.vmem [shape: f32[40,128], index: 0, kind: input, shape index: {}]   ;;  %s1967_s1 = inlined_call_operand.vmem [shape: f32[4,2,32], index: 1, kind: input, shape index: {}]   ;;  %s1968_s2 = inlined_call_operand.vmem [shape: f32[136,256], index: 2, kind: input, shape index: {}]   ;;  %s1969_s3 = inlined_call_operand.vmem [shape: f32[48,40], index: 3, kind: input, shape index: {}]   ;;  %s1970_s4 = inlined_call_operand.hbm [shape: f32[2,2], index: 4, kind: output, shape index: {}]  }
   0x1   :  { %v19_v0 = vld [vmem:[%s1966_s0] sm:$0xff]  ;;  %v20_v1 = vld [vmem:[%s1966_s0 + $0x8] sm:$0xff]  ;;  %v21_v2 = vld [vmem:[%s1966_s0 + $0x10] sm:$0xff]  ;;  %1348 = vmatprep.subr.bf16.mxu0 %v1566_v3  ;;  %1315 = vmatprep.mubr.msk.f32.mxu0 %vm1567_vm0, %v1568_v6 }
   0x2   :  { %v1349_v4 = vpack.c.bf16 %v20_v1, %v19_v0  ;;  %v22_v5 = vld [vmem:[%s1966_s0 + $0x18] sm:$0xff] }
   0x3   :  { %9 = vsyncpa [#allocation3], 0  ;;  %v1352_v7 = vpack.c.bf16 %v22_v5, %v21_v2  ;;  %v23_v8 = vld [vmem:[%s1966_s0 + $0x20] sm:$0xff]  ;;  %vm24_vm1 = vcmask 326656   ;;  %v100_v11 = vld [vmem:[%s1968_s2 + $0x10] sm:$0xff]  ;;  %s1569_s21 = smov 64  }
   0x4   :  { %1350 = vmatpush3.bf16.msra.mxu0 %v1349_v4  ;;  %v18_v9 = vld [vmem:[%s1969_s3] sm:$0x3f]  ;;  %v239_v12 = vld [vmem:[%s1968_s2 + $0x88] sm:$0xff]  ;;  %v241_v14 = vld [vmem:[%s1968_s2 + $0x98] sm:$0xff]  ;;  %s1570_s24 = smov 32   ;;  %vm139_vm2 = vcmask 1040384  }
   0x5   :  { %1351 = vmatprep.subr.bf16.mxu0 %v1566_v3  ;;  %v99_v10 = vld [vmem:[%s1968_s2] sm:$0xff]  ;;  %v102_v16 = vld [vmem:[%s1968_s2 + $0x30] sm:$0xff]  ;;  %v1639_v17 = vpack.c.bf16 %v241_v14, %v239_v12  ;;  %v243_v22 = vld [vmem:[%s1968_s2 + $0xa8] sm:$0xff]  ;;  %vm141_vm3 = vcmask 1041408   ;;  %vm143_vm4 = vcmask 1042432   ;;  %vm145_vm5 = vcmask 1043456  }
   0x6   :  { %v1354_v13 = vpack.c.bf16 %v100_v11, %v99_v10  ;;  %v101_v15 = vld [vmem:[%s1968_s2 + $0x20] sm:$0xff]  ;;  %v240_v20 = vld [vmem:[%s1968_s2 + $0x90] sm:$0xff]  ;;  %v245_v23 = vld [vmem:[%s1968_s2 + $0xb8] sm:$0xff]  ;;  %vm147_vm6 = vcmask 1044480   ;;  %vm149_vm7 = vcmask 1045504   ;;  %vm151_vm8 = vcmask 1046528  }
   0x7   :  { %v1358_v18 = vpack.c.bf16 %v102_v16, %v101_v15  ;;  %v238_v19 = vld [vmem:[%s1968_s2 + $0x80] sm:$0xff]  ;;  %v1657_v24 = vpack.c.bf16 %v245_v23, %v243_v22  ;;  %v104_v26 = vld [vmem:[%s1968_s2 + $0x50] sm:$0xff]  ;;  %v247_v31 = vld [vmem:[%s1968_s2 + $0xc8] sm:$0xff]  ;;  %vm156_vm9 = vcmask 523264   ;;  %vm270_vm10 = vcmask 261120   ;;  %s1571_s16 = smov [#allocation2]  }
   0x8   :  { %1353 = vmatpush3.bf16.msra.mxu0 %v1352_v7  ;;  %1355 = vmatprep.subr.bf16.mxu1 %v1354_v13  ;;  %v1647_v21 = vpack.c.bf16 %v240_v20, %v238_v19  ;;  %v103_v25 = vld [vmem:[%s1968_s2 + $0x40] sm:$0xff]  ;;  %v244_v29 = vld [vmem:[%s1968_s2 + $0xb0] sm:$0xff]  ;;  %v249_v32 = vld [vmem:[%s1968_s2 + $0xd8] sm:$0xff]  ;;  %v254_v14 = vlaneseq  ;;  %s1261_s17 = sshll.u32 %s1571_s16, 4  ;;  %vm1253_vm14 = vcmask 9216   ;;  %s1262_s17 = int_to_ptr.vmem [resolvable:$true] %s1261_s17 }
   0x9   :  { %1313 = vmatprep.subr.mxu0 %v1568_v6  ;;  %1357 = vmatpush3.bf16.msra.mxu1 %v1354_v13  ;;  %v242_v27 = vld [vmem:[%s1968_s2 + $0xa0] sm:$0xff]  ;;  %v1362_v28 = vpack.c.bf16 %v104_v26, %v103_v25  ;;  %v1681_v33 = vpack.c.bf16 %v249_v32, %v247_v31  ;;  %v106_v35 = vld [vmem:[%s1968_s2 + $0x70] sm:$0xff]  ;;  %v251_v40 = vld [vmem:[%s1968_s2 + $0xe8] sm:$0xff]  ;;  %s1542_s18 = scalar_lea.vmem %s1262_s17, 32  ;;  %p1547_p1 = scmp.lt.s32.totalorder %s1262_s17, %s1262_s17 }
   0xa   :  { %1359 = vmatprep.subr.bf16.mxu1 %v1358_v18  ;;  %v1672_v30 = vpack.c.bf16 %v244_v29, %v242_v27  ;;  %v105_v34 = vld [vmem:[%s1968_s2 + $0x60] sm:$0xff]  ;;  %v248_v38 = vld [vmem:[%s1968_s2 + $0xd0] sm:$0xff]  ;;  %v253_v41 = vld [vmem:[%s1968_s2 + $0xf8] sm:$0xff]  ;;  %v255_v16 = vand.u32 127, %v254_v14  ;;  %p1543_p0 = scmp.ne.s32.totalorder %s1262_s17, %s1542_s18  ;;  %p1548_p2 = scmp.lt.s32.totalorder %s1542_s18, %s1542_s18 }
   0xb   :  { %v246_v36 = vld [vmem:[%s1968_s2 + $0xc0] sm:$0xff]  ;;  %v1366_v37 = vpack.c.bf16 %v106_v35, %v105_v34  ;;  %v1705_v43 = vpack.c.bf16 %v253_v41, %v251_v40  ;;  %v252_v45 = vld [vmem:[%s1968_s2 + $0xf0] sm:$0xff]  ;;  %v1171_v27 = vld [vmem:[%s1969_s3 + $0x18] sm:$0xff] }
   0xc   :  { %1314 = vmatpush3.msra.mxu0 %v23_v8  ;;  %v1696_v39 = vpack.c.bf16 %v248_v38, %v246_v36  ;;  %v250_v44 = vld [vmem:[%s1968_s2 + $0xe0] sm:$0xff]  ;;  %vm256_vm11 = vcmp.ge.s32.totalorder %v255_v16, 64  ;;  %vm257_vm12 = vcmp.lt.s32.totalorder %v255_v16, 96  ;;  %p1549_p3 = por %p1548_p2, %p1547_p1 }
   0xd   :  { %1316 = vmatmul.mubr.msk.f32.vlgmr.msra.gmra.mrb[0].mxu0 %vm24_vm1, %v18_v9  ;;  %1371 = vmatprep.subr.bf16.mxu0 %v1639_v17  ;;  %v1713_v48 = vpack.c.bf16 %v252_v45, %v250_v44  ;;  %v1272_v55 = vld [vmem:[%s1967_s1 + $0x2] sm:$0x3]  ;;  %v1273_v56 = vld [vmem:[%s1967_s1 + $0x4] sm:$0x3]  ;;  %v259_v11 = vld [vmem:[%s1967_s1] sm:$0x3] }
   0xe   :  { %339 = vmatprep.mubr.f32.mxu0 %v1568_v6  ;;  %1373 = vmatpush1.bf16.msra.mxu0 %v1647_v21  ;;  %v107_v15 = vld [vmem:[%s1968_s2 + $0x100] ss:$0 sm:$0xff]  ;;  %vm1768_vm13 = vmand %vm256_vm11, %vm257_vm12  ;;  %p1550_p4 = pnand %p1549_p3, %p1543_p0 }
   0xf   :  { %1361 = vmatpush3.bf16.msra.mxu1 %v1358_v18  ;;  %1375 = vmatprep.subr.bf16.mxu0 %v1657_v24 }
  0x10   :  { %1363 = vmatprep.subr.bf16.mxu1 %v1362_v28 }
  0x12   :  { %1377 = vmatpush1.bf16.msra.mxu0 %v1672_v30 }
  0x13   :  { %1365 = vmatpush3.bf16.msra.mxu1 %v1362_v28  ;;  %1379 = vmatprep.subr.bf16.mxu0 %v1681_v33 }
  0x14   :  { %1367 = vmatprep.subr.bf16.mxu1 %v1366_v37 }
  0x16   :  { %1381 = vmatpush1.bf16.msra.mxu0 %v1696_v39 }
  0x17   :  { %1369 = vmatpush3.bf16.msra.mxu1 %v1366_v37  ;;  %1383 = vmatprep.subr.bf16.mxu0 %v1705_v43 }
  0x18   :  { %1387 = vmatprep.subr.bf16.mxu1 %v1639_v17 }
  0x1a   :  { %1385 = vmatpush1.bf16.msra.mxu0 %v1713_v48 }
  0x1b   :  { %1403 = vmatprep.subr.bf16.mxu0 %v1639_v17 }
  0xe0   :  { %v94_v42 = vpop.f32.mrb[0].mxu0 }
  0xe1   :  { %v98_v46 = vmax.f32 %v94_v42, 0.0  ;;  %v1317_v47 = vpop.f32.mrb[1].mxu0 }
  0xe3   :  { %v120_v49 = vrot.slane %v98_v46, 5  ;;  %v110_v50 = vrot.slane %v98_v46, 7  ;;  %v130_v51 = vrot.slane %v98_v46, 3  ;;  %v115_v52 = vrot.slane %v98_v46, 6 }
  0xe4   :  { %v135_v53 = vrot.slane %v98_v46, 2  ;;  %v125_v54 = vrot.slane %v98_v46, 4 }
  0xe5   :  { %121 = vrot.lane.b32.xlu1 %v120_v49, %s1569_s21  ;;  %111 = vrot.lane.b32.xlu0 %v110_v50, %s1569_s21 }
  0xe9   :  { %131 = vrot.lane.b32.xlu1 %v130_v51, %s1569_s21  ;;  %116 = vrot.lane.b32.xlu0 %v115_v52, %s1569_s21 }
  0xed   :  { %136 = vrot.lane.b32.xlu1 %v135_v53, %s1569_s21  ;;  %126 = vrot.lane.b32.xlu0 %v125_v54, %s1569_s21 }
  0xf1   :  { %267 = vrot.lane.b32.xlu0 %v1272_v55, %s1570_s24 }
  0xf5   :  { %353 = vrot.lane.b32.xlu0 %v1273_v56, %s1570_s24 }
 0x157   :  { %v122_v57 = vpop.permute.xlu1 %121  ;;  %v112_v58 = vpop.permute.xlu0 %111 }
 0x158   :  { %v140_v59 = vsel %vm139_vm2, %v98_v46, %v112_v58 }
 0x159   :  { %v142_v61 = vsel %vm141_vm3, %v140_v59, %v110_v50  ;;  %v1794_v50 = vld [vmem:[%s1968_s2 + $0x108] ss:$0 sm:$0xff] }
 0x15b   :  { %v132_v60 = vpop.permute.xlu1 %131  ;;  %v117_v62 = vpop.permute.xlu0 %116 }
 0x15c   :  { %v153_v63 = vsel %vm139_vm2, %v125_v54, %v132_v60  ;;  %v144_v0 = vsel %vm143_vm4, %v142_v61, %v117_v62 }
 0x15d   :  { %v146_v1 = vsel %vm145_vm5, %v144_v0, %v115_v52  ;;  %v154_v4 = vsel %vm141_vm3, %v153_v63, %v130_v51 }
 0x15e   :  { %v148_v2 = vsel %vm147_vm6, %v146_v1, %v122_v57 }
 0x15f   :  { %v137_v5 = vpop.permute.xlu1 %136  ;;  %v127_v7 = vpop.permute.xlu0 %126  ;;  %v150_v8 = vsel %vm149_vm7, %v148_v2, %v120_v49 }
 0x160   :  { %v155_v9 = vsel %vm143_vm4, %v154_v4, %v137_v5  ;;  %v152_v10 = vsel %vm151_vm8, %v150_v8, %v127_v7  ;;  %v1274_v4 = vld [vmem:[%s1967_s1 + $0x6] sm:$0x3] }
 0x161   :  { %1334 = vmatprep.mubr.msk.f32.mxu1 %vm156_vm9, %v152_v10 }
 0x162   :  { %1335 = vmatmul.mubr.msk.f32.vlgmr.msra.gmra.mrb[0].mxu1 %vm156_vm9, %v155_v9 }
 0x163   :  { %v268_v12 = vpop.permute.xlu0 %267  ;;  %1389 = vmatpush1.bf16.msra.mxu1 %v1647_v21  ;;  %445 = vmatprep.mubr.f32.mxu1 %v1568_v6 }
 0x164   :  { %v271_v13 = vsel %vm270_vm10, %v259_v11, %v268_v12  ;;  %1391 = vmatprep.subr.bf16.mxu1 %v1657_v24 }
 0x165   :  { %1275 = vmatmul.mubr.msk.f32.vlgmr.msra.gmra.mrb[2].mxu0 %vm156_vm9, %v271_v13 }
 0x166   :  { %1405 = vmatpush1.bf16.msra.mxu0 %v1647_v21  ;;  %588 = vmatprep.mubr.f32.mxu0 %v1568_v6 }
 0x167   :  { %1393 = vmatpush1.bf16.msra.mxu1 %v1672_v30  ;;  %1407 = vmatprep.subr.bf16.mxu0 %v1657_v24  ;;  %v354_v38 = vpop.permute.xlu0 %353 }
 0x168   :  { %1395 = vmatprep.subr.bf16.mxu1 %v1681_v33 }
 0x16a   :  { %1409 = vmatpush1.bf16.msra.mxu0 %v1672_v30 }
 0x16b   :  { %1397 = vmatpush1.bf16.msra.mxu1 %v1696_v39  ;;  %1411 = vmatprep.subr.bf16.mxu0 %v1681_v33 }
 0x16c   :  { %1399 = vmatprep.subr.bf16.mxu1 %v1705_v43 }
 0x16e   :  { %1413 = vmatpush1.bf16.msra.mxu0 %v1696_v39 }
 0x16f   :  { %1401 = vmatpush1.bf16.msra.mxu1 %v1713_v48  ;;  %1415 = vmatprep.subr.bf16.mxu0 %v1705_v43 }
 0x170   :  { %1419 = vmatprep.subr.bf16.mxu1 %v1639_v17 }
 0x172   :  { %1417 = vmatpush1.bf16.msra.mxu0 %v1713_v48 }
 0x173   :  { %1435 = vmatprep.subr.bf16.mxu0 %v1639_v17 }
 0x235   :  { %v1336_v18 = vpop.f32.mrb[0].mxu1 }
 0x236   :  { %v1763_v19 = vadd.f32 %v1336_v18, %v107_v15  ;;  %v229_v20 = vpop.f32.mrb[1].mxu1 }
 0x237   :  { %v1765_v22 = vadd.f32 %v229_v20, %v107_v15 }
 0x238   :  { %v341_v23 = vpop.f32.mrb[2].mxu0 }
 0x239   :  { %v342_v25 = vpop.f32.mrb[3].mxu0 }
 0x23a   :  { %v345_v26 = vadd.f32 %v342_v25, %v1765_v22 }
 0x23c   :  { %v346_v28 = vmul.f32 0.5, %v345_v26 }
 0x23e   :  { %v347_v29 = vsel %vm1768_vm13, %v345_v26, %v346_v28 }
 0x23f   :  { %1494 = vtanh.f32 %v347_v29 }
 0x249   :  { %v1495_v31 = vpop.eup %1494 }
 0x24a   :  { %v349_v32 = vmul.f32 0.5, %v1495_v31 }
 0x24c   :  { %v350_v34 = vadd.f32 0.5, %v349_v32 }
 0x24e   :  { %v351_v35 = vsel %vm1768_vm13, %v1495_v31, %v350_v34 }
 0x24f   :  { %358 = vrot.lane.b32.xlu1 %v351_v35, %s1569_s21  ;;  %v356_v40 = vmul.f32 %v354_v38, %v351_v35 }
 0x2c1   :  { %v359_v36 = vpop.permute.xlu1 %358 }
 0x2c2   :  { %v361_v37 = vmul.f32 %v359_v36, %v351_v35 }
 0x2c4   :  { %363 = vrot.lane.b32.xlu1 %v361_v37, %s1570_s24 }
 0x336   :  { %v364_v41 = vpop.permute.xlu1 %363 }
 0x337   :  { %v366_v42 = vadd.f32 %v364_v41, %v356_v40 }
 0x339   :  { %1496 = vtanh.f32 %v366_v42  ;;  %v491_v13 = vrot.slane %v366_v42, 6 }
 0x343   :  { %v1497_v44 = vpop.eup %1496 }
 0x344   :  { %369 = vrot.lane.b32.xlu0 %v1497_v44, %s1569_s21 }
 0x3b6   :  { %v370_v45 = vpop.permute.xlu0 %369 }
 0x3b7   :  { %v372_v46 = vmul.f32 %v370_v45, %v351_v35 }
 0x3b9   :  { %374 = vrot.lane.b32.xlu1 %v372_v46, %s1570_s24 }
 0x42b   :  { %v375_v47 = vpop.permute.xlu1 %374 }
 0x42c   :  { %v377_v49 = vsel %vm270_vm10, %v375_v47, %v268_v12 }
 0x42d   :  { %1276 = vmatmul.mubr.msk.f32.vlgmr.msra.gmra.mrb[2].mxu1 %vm156_vm9, %v377_v49 }
 0x42e   :  { %1421 = vmatpush1.bf16.msra.mxu1 %v1647_v21  ;;  %727 = vmatprep.mubr.f32.mxu1 %v1568_v6 }
 0x42f   :  { %1423 = vmatprep.subr.bf16.mxu1 %v1657_v24 }
 0x432   :  { %1425 = vmatpush1.bf16.msra.mxu1 %v1672_v30 }
 0x433   :  { %1427 = vmatprep.subr.bf16.mxu1 %v1681_v33 }
 0x436   :  { %1429 = vmatpush1.bf16.msra.mxu1 %v1696_v39 }
 0x437   :  { %1431 = vmatprep.subr.bf16.mxu1 %v1705_v43 }
 0x43a   :  { %1433 = vmatpush1.bf16.msra.mxu1 %v1713_v48 }
 0x43b   :  { %1451 = vmatprep.subr.bf16.mxu1 %v1639_v17 }
 0x500   :  { %v447_v51 = vpop.f32.mrb[2].mxu1 }
 0x501   :  { %v452_v52 = vadd.f32 %v447_v51, %v1794_v50  ;;  %v449_v53 = vpop.f32.mrb[3].mxu1 }
 0x502   :  { %v481_v54 = vrot.slane %v449_v53, 6 }
 0x503   :  { %v453_v55 = vmul.f32 0.5, %v452_v52 }
 0x504   :  { %v483_v56 = vadd.f32 %v481_v54, %v1765_v22 }
 0x505   :  { %v454_v57 = vsel %vm1768_vm13, %v452_v52, %v453_v55 }
 0x506   :  { %1498 = vtanh.f32 %v454_v57  ;;  %v484_v58 = vmul.f32 0.5, %v483_v56 }
 0x508   :  { %v485_v59 = vsel %vm1768_vm13, %v483_v56, %v484_v58 }
 0x509   :  { %1500 = vtanh.f32 %v485_v59 }
 0x510   :  { %v1499_v60 = vpop.eup %1498 }
 0x511   :  { %v456_v61 = vmul.f32 0.5, %v1499_v60 }
 0x513   :  { %v1501_v62 = vpop.eup %1500  ;;  %v457_v63 = vadd.f32 0.5, %v456_v61 }
 0x514   :  { %v487_v0 = vmul.f32 0.5, %v1501_v62 }
 0x515   :  { %v458_v1 = vsel %vm1768_vm13, %v1499_v60, %v457_v63 }
 0x516   :  { %465 = vrot.lane.b32.xlu0 %v458_v1, %s1569_s21  ;;  %v488_v2 = vadd.f32 0.5, %v487_v0 }
 0x518   :  { %v489_v5 = vsel %vm1768_vm13, %v1501_v62, %v488_v2 }
 0x519   :  { %495 = vrot.lane.b32.xlu1 %v489_v5, %s1569_s21  ;;  %v493_v16 = vmul.f32 %v491_v13, %v489_v5 }
 0x51a   :  { %460 = vrot.lane.b32.xlu0 %v1274_v4, %s1570_s24 }
 0x588   :  { %v466_v7 = vpop.permute.xlu0 %465 }
 0x589   :  { %v468_v8 = vmul.f32 %v466_v7, %v458_v1 }
 0x58b   :  { %470 = vrot.lane.b32.xlu1 %v468_v8, %s1570_s24  ;;  %v496_v9 = vpop.permute.xlu1 %495 }
 0x58c   :  { %v498_v10 = vmul.f32 %v496_v9, %v489_v5  ;;  %v461_v11 = vpop.permute.xlu0 %460 }
 0x58d   :  { %v463_v12 = vmul.f32 %v461_v11, %v458_v1 }
 0x58e   :  { %500 = vrot.lane.b32.xlu0 %v498_v10, %s1570_s24 }
 0x5fd   :  { %v471_v14 = vpop.permute.xlu1 %470 }
 0x5fe   :  { %v473_v15 = vadd.f32 %v471_v14, %v463_v12 }
 0x600   :  { %1502 = vtanh.f32 %v473_v15  ;;  %v501_v18 = vpop.permute.xlu0 %500 }
 0x601   :  { %v503_v20 = vadd.f32 %v501_v18, %v493_v16 }
 0x603   :  { %1504 = vtanh.f32 %v503_v20  ;;  %v630_v63 = vrot.slane %v503_v20, 6 }
 0x60a   :  { %v1503_v23 = vpop.eup %1502 }
 0x60b   :  { %476 = vrot.lane.b32.xlu1 %v1503_v23, %s1569_s21 }
 0x60d   :  { %v1505_v25 = vpop.eup %1504 }
 0x60e   :  { %506 = vrot.lane.b32.xlu0 %v1505_v25, %s1569_s21 }
 0x67d   :  { %v477_v26 = vpop.permute.xlu1 %476 }
 0x67e   :  { %v479_v28 = vmul.f32 %v477_v26, %v458_v1 }
 0x680   :  { %v515_v29 = vrot.slane %v479_v28, 6  ;;  %v507_v31 = vpop.permute.xlu0 %506 }
 0x681   :  { %v509_v32 = vmul.f32 %v507_v31, %v489_v5 }
 0x682   :  { %516 = vrot.lane.b32.xlu0 %v515_v29, %s1569_s21 }
 0x683   :  { %511 = vrot.lane.b32.xlu1 %v509_v32, %s1570_s24 }
 0x6f4   :  { %v517_v34 = vpop.permute.xlu0 %516 }
 0x6f5   :  { %v512_v35 = vpop.permute.xlu1 %511 }
 0x6f6   :  { %v519_v36 = vsel %vm270_vm10, %v512_v35, %v517_v34 }
 0x6f7   :  { %v521_v37 = vrot.slane %v519_v36, 2 }
 0x6f9   :  { %1277 = vmatmul.mubr.msk.f32.vlgmr.msra.gmra.mrb[4].mxu0 %vm156_vm9, %v521_v37 }
 0x6fa   :  { %1437 = vmatpush1.bf16.msra.mxu0 %v1647_v21  ;;  %866 = vmatprep.mubr.f32.mxu0 %v1568_v6 }
 0x6fb   :  { %1439 = vmatprep.subr.bf16.mxu0 %v1657_v24 }
 0x6fe   :  { %1441 = vmatpush1.bf16.msra.mxu0 %v1672_v30 }
 0x6ff   :  { %1443 = vmatprep.subr.bf16.mxu0 %v1681_v33 }
 0x702   :  { %1445 = vmatpush1.bf16.msra.mxu0 %v1696_v39 }
 0x703   :  { %1447 = vmatprep.subr.bf16.mxu0 %v1705_v43 }
 0x706   :  { %1449 = vmatpush1.bf16.msra.mxu0 %v1713_v48 }
 0x707   :  { %1467 = vmatprep.subr.bf16.mxu0 %v1639_v17 }
 0x7cc   :  { %v590_v38 = vpop.f32.mrb[4].mxu0 }
 0x7cd   :  { %v595_v40 = vadd.f32 %v590_v38, %v1794_v50  ;;  %v592_v41 = vpop.f32.mrb[5].mxu0 }
 0x7ce   :  { %v620_v42 = vrot.slane %v592_v41, 4 }
 0x7cf   :  { %v596_v44 = vmul.f32 0.5, %v595_v40 }
 0x7d0   :  { %v622_v45 = vadd.f32 %v620_v42, %v1765_v22 }
 0x7d1   :  { %v597_v46 = vsel %vm1768_vm13, %v595_v40, %v596_v44 }
 0x7d2   :  { %1506 = vtanh.f32 %v597_v46  ;;  %v623_v47 = vmul.f32 0.5, %v622_v45 }
 0x7d4   :  { %v624_v49 = vsel %vm1768_vm13, %v622_v45, %v623_v47 }
 0x7d5   :  { %1508 = vtanh.f32 %v624_v49 }
 0x7dc   :  { %v1507_v51 = vpop.eup %1506 }
 0x7dd   :  { %v599_v52 = vmul.f32 0.5, %v1507_v51 }
 0x7df   :  { %v1509_v17 = vpop.eup %1508  ;;  %v600_v53 = vadd.f32 0.5, %v599_v52 }
 0x7e0   :  { %v626_v54 = vmul.f32 0.5, %v1509_v17 }
 0x7e1   :  { %v601_v55 = vsel %vm1768_vm13, %v1507_v51, %v600_v53 }
 0x7e2   :  { %604 = vrot.lane.b32.xlu1 %v601_v55, %s1569_s21  ;;  %v627_v56 = vadd.f32 0.5, %v626_v54  ;;  %v602_v62 = vmul.f32 %v601_v55, %v473_v15 }
 0x7e4   :  { %v628_v57 = vsel %vm1768_vm13, %v1509_v17, %v627_v56 }
 0x7e5   :  { %634 = vrot.lane.b32.xlu0 %v628_v57, %s1569_s21  ;;  %v632_v2 = vmul.f32 %v630_v63, %v628_v57 }
 0x854   :  { %v605_v58 = vpop.permute.xlu1 %604 }
 0x855   :  { %v607_v59 = vmul.f32 %v605_v58, %v601_v55 }
 0x857   :  { %609 = vrot.lane.b32.xlu1 %v607_v59, %s1570_s24  ;;  %v635_v60 = vpop.permute.xlu0 %634 }
 0x858   :  { %v637_v61 = vmul.f32 %v635_v60, %v628_v57 }
 0x85a   :  { %639 = vrot.lane.b32.xlu0 %v637_v61, %s1570_s24 }
 0x8c9   :  { %v610_v0 = vpop.permute.xlu1 %609 }
 0x8ca   :  { %v612_v1 = vadd.f32 %v610_v0, %v602_v62 }
 0x8cc   :  { %1510 = vtanh.f32 %v612_v1  ;;  %v640_v4 = vpop.permute.xlu0 %639 }
 0x8cd   :  { %v642_v5 = vadd.f32 %v640_v4, %v632_v2 }
 0x8cf   :  { %1512 = vtanh.f32 %v642_v5  ;;  %v769_v51 = vrot.slane %v642_v5, 6 }
 0x8d6   :  { %v1511_v7 = vpop.eup %1510 }
 0x8d7   :  { %615 = vrot.lane.b32.xlu1 %v1511_v7, %s1569_s21 }
 0x8d9   :  { %v1513_v8 = vpop.eup %1512 }
 0x8da   :  { %645 = vrot.lane.b32.xlu0 %v1513_v8, %s1569_s21 }
 0x949   :  { %v616_v9 = vpop.permute.xlu1 %615 }
 0x94a   :  { %v618_v10 = vmul.f32 %v616_v9, %v601_v55 }
 0x94c   :  { %v654_v11 = vrot.slane %v618_v10, 4  ;;  %v646_v12 = vpop.permute.xlu0 %645 }
 0x94d   :  { %v648_v13 = vmul.f32 %v646_v12, %v628_v57 }
 0x94e   :  { %655 = vrot.lane.b32.xlu0 %v654_v11, %s1569_s21 }
 0x94f   :  { %650 = vrot.lane.b32.xlu1 %v648_v13, %s1570_s24 }
 0x9c0   :  { %v656_v14 = vpop.permute.xlu0 %655 }
 0x9c1   :  { %v651_v15 = vpop.permute.xlu1 %650 }
 0x9c2   :  { %v658_v16 = vsel %vm270_vm10, %v651_v15, %v656_v14 }
 0x9c3   :  { %v660_v18 = vrot.slane %v658_v16, 4 }
 0x9c5   :  { %1278 = vmatmul.mubr.msk.f32.vlgmr.msra.gmra.mrb[4].mxu1 %vm156_vm9, %v660_v18 }
 0x9c6   :  { %1453 = vmatpush1.bf16.msra.mxu1 %v1647_v21  ;;  %1000 = vmatprep.mubr.f32.mxu1 %v1568_v6 }
 0x9c7   :  { %1455 = vmatprep.subr.bf16.mxu1 %v1657_v24 }
 0x9ca   :  { %1457 = vmatpush1.bf16.msra.mxu1 %v1672_v30 }
 0x9cb   :  { %1459 = vmatprep.subr.bf16.mxu1 %v1681_v33 }
 0x9ce   :  { %1461 = vmatpush1.bf16.msra.mxu1 %v1696_v39 }
 0x9cf   :  { %1463 = vmatprep.subr.bf16.mxu1 %v1705_v43 }
 0x9d2   :  { %1465 = vmatpush1.bf16.msra.mxu1 %v1713_v48 }
 0x9d3   :  { %1482 = vmatprep.subr.bf16.mxu1 %v1566_v3 }
 0xa98   :  { %v729_v20 = vpop.f32.mrb[4].mxu1 }
 0xa99   :  { %v734_v23 = vadd.f32 %v729_v20, %v1794_v50  ;;  %v731_v25 = vpop.f32.mrb[5].mxu1 }
 0xa9a   :  { %v759_v26 = vrot.slane %v731_v25, 2 }
 0xa9b   :  { %v735_v28 = vmul.f32 0.5, %v734_v23 }
 0xa9c   :  { %v761_v29 = vadd.f32 %v759_v26, %v1765_v22 }
 0xa9d   :  { %v736_v31 = vsel %vm1768_vm13, %v734_v23, %v735_v28 }
 0xa9e   :  { %1514 = vtanh.f32 %v736_v31  ;;  %v762_v32 = vmul.f32 0.5, %v761_v29 }
 0xaa0   :  { %v763_v34 = vsel %vm1768_vm13, %v761_v29, %v762_v32 }
 0xaa1   :  { %1516 = vtanh.f32 %v763_v34 }
 0xaa8   :  { %v1515_v35 = vpop.eup %1514 }
 0xaa9   :  { %v738_v36 = vmul.f32 0.5, %v1515_v35 }
 0xaab   :  { %v1517_v37 = vpop.eup %1516  ;;  %v739_v38 = vadd.f32 0.5, %v738_v36 }
 0xaac   :  { %v765_v40 = vmul.f32 0.5, %v1517_v37 }
 0xaad   :  { %v740_v41 = vsel %vm1768_vm13, %v1515_v35, %v739_v38 }
 0xaae   :  { %743 = vrot.lane.b32.xlu1 %v740_v41, %s1569_s21  ;;  %v766_v22 = vadd.f32 0.5, %v765_v40  ;;  %v741_v49 = vmul.f32 %v740_v41, %v612_v1 }
 0xab0   :  { %v767_v42 = vsel %vm1768_vm13, %v1517_v37, %v766_v22 }
 0xab1   :  { %773 = vrot.lane.b32.xlu0 %v767_v42, %s1569_s21  ;;  %v771_v53 = vmul.f32 %v769_v51, %v767_v42 }
 0xb20   :  { %v744_v44 = vpop.permute.xlu1 %743 }
 0xb21   :  { %v746_v45 = vmul.f32 %v744_v44, %v740_v41 }
 0xb23   :  { %748 = vrot.lane.b32.xlu1 %v746_v45, %s1570_s24  ;;  %v774_v46 = vpop.permute.xlu0 %773 }
 0xb24   :  { %v776_v47 = vmul.f32 %v774_v46, %v767_v42 }
 0xb26   :  { %778 = vrot.lane.b32.xlu0 %v776_v47, %s1570_s24 }
 0xb95   :  { %v749_v52 = vpop.permute.xlu1 %748 }
 0xb96   :  { %v751_v17 = vadd.f32 %v749_v52, %v741_v49 }
 0xb98   :  { %1518 = vtanh.f32 %v751_v17  ;;  %v779_v54 = vpop.permute.xlu0 %778 }
 0xb99   :  { %v781_v55 = vadd.f32 %v779_v54, %v771_v53 }
 0xb9b   :  { %1520 = vtanh.f32 %v781_v55  ;;  %v905_v20 = vrot.slane %v781_v55, 6 }
 0xba2   :  { %v1519_v56 = vpop.eup %1518 }
 0xba3   :  { %754 = vrot.lane.b32.xlu1 %v1519_v56, %s1569_s21 }
 0xba5   :  { %v1521_v57 = vpop.eup %1520 }
 0xba6   :  { %784 = vrot.lane.b32.xlu0 %v1521_v57, %s1569_s21 }
 0xc15   :  { %v755_v58 = vpop.permute.xlu1 %754 }
 0xc16   :  { %v757_v59 = vmul.f32 %v755_v58, %v740_v41 }
 0xc18   :  { %v793_v60 = vrot.slane %v757_v59, 2  ;;  %v785_v61 = vpop.permute.xlu0 %784 }
 0xc19   :  { %v787_v62 = vmul.f32 %v785_v61, %v767_v42 }
 0xc1a   :  { %794 = vrot.lane.b32.xlu0 %v793_v60, %s1569_s21 }
 0xc1b   :  { %789 = vrot.lane.b32.xlu1 %v787_v62, %s1570_s24 }
 0xc8c   :  { %v795_v63 = vpop.permute.xlu0 %794 }
 0xc8d   :  { %v790_v0 = vpop.permute.xlu1 %789 }
 0xc8e   :  { %v797_v1 = vsel %vm270_vm10, %v790_v0, %v795_v63 }
 0xc8f   :  { %v799_v2 = vrot.slane %v797_v1, 6 }
 0xc91   :  { %1279 = vmatmul.mubr.msk.f32.vlgmr.msra.gmra.mrb[6].mxu0 %vm156_vm9, %v799_v2 }
 0xc92   :  { %1469 = vmatpush1.bf16.msra.mxu0 %v1647_v21  ;;  %1139 = vmatprep.mubr.f32.mxu0 %v1568_v6 }
 0xc93   :  { %1471 = vmatprep.subr.bf16.mxu0 %v1657_v24 }
 0xc96   :  { %1473 = vmatpush1.bf16.msra.mxu0 %v1672_v30 }
 0xc97   :  { %1475 = vmatprep.subr.bf16.mxu0 %v1681_v33 }
 0xc9a   :  { %1477 = vmatpush1.bf16.msra.mxu0 %v1696_v39 }
 0xc9b   :  { %1479 = vmatprep.subr.bf16.mxu0 %v1705_v43 }
 0xc9e   :  { %1481 = vmatpush1.bf16.msra.mxu0 %v1713_v48 }
 0xd64   :  { %v868_v4 = vpop.f32.mrb[6].mxu0 }
 0xd65   :  { %v873_v5 = vadd.f32 %v868_v4, %v1794_v50  ;;  %v870_v7 = vpop.f32.mrb[7].mxu0 }
 0xd66   :  { %v897_v21 = vadd.f32 %v870_v7, %v1763_v19 }
 0xd67   :  { %v874_v8 = vmul.f32 0.5, %v873_v5 }
 0xd68   :  { %v898_v9 = vmul.f32 0.5, %v897_v21 }
 0xd69   :  { %v875_v24 = vsel %vm1768_vm13, %v873_v5, %v874_v8 }
 0xd6a   :  { %1522 = vtanh.f32 %v875_v24  ;;  %v899_v30 = vsel %vm1768_vm13, %v897_v21, %v898_v9 }
 0xd6b   :  { %1524 = vtanh.f32 %v899_v30 }
 0xd74   :  { %v1523_v33 = vpop.eup %1522 }
 0xd75   :  { %v1525_v39 = vpop.eup %1524  ;;  %v877_v43 = vmul.f32 0.5, %v1523_v33 }
 0xd76   :  { %v901_v48 = vmul.f32 0.5, %v1525_v39 }
 0xd77   :  { %v878_v10 = vadd.f32 0.5, %v877_v43 }
 0xd78   :  { %v902_v11 = vadd.f32 0.5, %v901_v48 }
 0xd79   :  { %v879_v12 = vsel %vm1768_vm13, %v1523_v33, %v878_v10 }
 0xd7a   :  { %882 = vrot.lane.b32.xlu1 %v879_v12, %s1569_s21  ;;  %v903_v13 = vsel %vm1768_vm13, %v1525_v39, %v902_v11  ;;  %v880_v23 = vmul.f32 %v879_v12, %v751_v17 }
 0xd7b   :  { %909 = vrot.lane.b32.xlu0 %v903_v13, %s1569_s21  ;;  %v907_v26 = vmul.f32 %v905_v20, %v903_v13 }
 0xdec   :  { %v883_v14 = vpop.permute.xlu1 %882 }
 0xded   :  { %v885_v15 = vmul.f32 %v883_v14, %v879_v12  ;;  %v910_v16 = vpop.permute.xlu0 %909 }
 0xdee   :  { %v912_v18 = vmul.f32 %v910_v16, %v903_v13 }
 0xdef   :  { %887 = vrot.lane.b32.xlu1 %v885_v15, %s1570_s24 }
 0xdf0   :  { %914 = vrot.lane.b32.xlu0 %v912_v18, %s1570_s24 }
 0xe61   :  { %v888_v25 = vpop.permute.xlu1 %887 }
 0xe62   :  { %v890_v28 = vadd.f32 %v888_v25, %v880_v23  ;;  %v915_v29 = vpop.permute.xlu0 %914 }
 0xe63   :  { %v917_v31 = vadd.f32 %v915_v29, %v907_v26 }
 0xe64   :  { %1526 = vtanh.f32 %v890_v28 }
 0xe65   :  { %1528 = vtanh.f32 %v917_v31  ;;  %v1042_v0 = vrot.slane %v917_v31, 6 }
 0xe6e   :  { %v1527_v32 = vpop.eup %1526 }
 0xe6f   :  { %v1529_v34 = vpop.eup %1528  ;;  %893 = vrot.lane.b32.xlu1 %v1527_v32, %s1569_s21  ;;  %v1169_v32 = vld [vmem:[%s1969_s3 + $0x8] sm:$0xff] }
 0xe70   :  { %920 = vrot.lane.b32.xlu0 %v1529_v34, %s1569_s21  ;;  %v1170_v34 = vld [vmem:[%s1969_s3 + $0x10] sm:$0xff] }
 0xee1   :  { %v894_v35 = vpop.permute.xlu1 %893 }
 0xee2   :  { %v896_v36 = vmul.f32 %v894_v35, %v879_v12  ;;  %v921_v37 = vpop.permute.xlu0 %920  ;;  %v1483_v35 = vpack.c.bf16 %v1170_v34, %v1169_v32 }
 0xee3   :  { %v923_v38 = vmul.f32 %v921_v37, %v903_v13 }
 0xee4   :  { %929 = vrot.lane.b32.xlu0 %v896_v36, %s1569_s21  ;;  %v1172_v36 = vld [vmem:[%s1969_s3 + $0x20] sm:$0xff] }
 0xee5   :  { %925 = vrot.lane.b32.xlu1 %v923_v38, %s1570_s24  ;;  %v1486_v37 = vpack.c.bf16 %v1172_v36, %v1171_v27 }
 0xf56   :  { %v930_v40 = vpop.permute.xlu0 %929 }
 0xf57   :  { %v926_v41 = vpop.permute.xlu1 %925 }
 0xf58   :  { %v932_v22 = vsel %vm270_vm10, %v926_v41, %v930_v40 }
 0xf59   :  { %1280 = vmatmul.mubr.msk.f32.vlgmr.msra.gmra.mrb[6].mxu1 %vm156_vm9, %v932_v22 }
 0xf5a   :  { %1345 = vmatprep.mubr.msk.f32.mxu1 %vm1567_vm0, %v1568_v6  ;;  %1484 = vmatpush3.bf16.msra.mxu1 %v1483_v35 }
 0xf5b   :  { %1485 = vmatprep.subr.bf16.mxu1 %v1566_v3 }
 0xf5e   :  { %1487 = vmatpush3.bf16.msra.mxu1 %v1486_v37 }
0x102c   :  { %v1002_v42 = vpop.f32.mrb[6].mxu1 }
0x102d   :  { %v1007_v44 = vadd.f32 %v1002_v42, %v1794_v50  ;;  %v1004_v45 = vpop.f32.mrb[7].mxu1  ;;  %v1282_v42 = vld [vmem:[%s1969_s3 + $0x28] ss:$0 sm:$0xff] }
0x102e   :  { %v1032_v46 = vrot.slane %v1004_v45, 6 }
0x102f   :  { %v1008_v47 = vmul.f32 0.5, %v1007_v44 }
0x1030   :  { %v1034_v49 = vadd.f32 %v1032_v46, %v1763_v19 }
0x1031   :  { %v1009_v51 = vsel %vm1768_vm13, %v1007_v44, %v1008_v47 }
0x1032   :  { %1530 = vtanh.f32 %v1009_v51  ;;  %v1035_v52 = vmul.f32 0.5, %v1034_v49 }
0x1034   :  { %v1036_v17 = vsel %vm1768_vm13, %v1034_v49, %v1035_v52 }
0x1035   :  { %1532 = vtanh.f32 %v1036_v17 }
0x103c   :  { %v1531_v53 = vpop.eup %1530 }
0x103d   :  { %v1011_v54 = vmul.f32 0.5, %v1531_v53 }
0x103f   :  { %v1533_v6 = vpop.eup %1532  ;;  %v1012_v55 = vadd.f32 0.5, %v1011_v54 }
0x1040   :  { %v1038_v56 = vmul.f32 0.5, %v1533_v6 }
0x1041   :  { %v1013_v57 = vsel %vm1768_vm13, %v1531_v53, %v1012_v55 }
0x1042   :  { %1016 = vrot.lane.b32.xlu1 %v1013_v57, %s1569_s21  ;;  %v1039_v19 = vadd.f32 0.5, %v1038_v56  ;;  %v1014_v63 = vmul.f32 %v1013_v57, %v890_v28 }
0x1044   :  { %v1040_v58 = vsel %vm1768_vm13, %v1533_v6, %v1039_v19 }
0x1045   :  { %1046 = vrot.lane.b32.xlu0 %v1040_v58, %s1569_s21  ;;  %v1044_v4 = vmul.f32 %v1042_v0, %v1040_v58 }
0x10b4   :  { %v1017_v59 = vpop.permute.xlu1 %1016 }
0x10b5   :  { %v1019_v60 = vmul.f32 %v1017_v59, %v1013_v57 }
0x10b7   :  { %1021 = vrot.lane.b32.xlu1 %v1019_v60, %s1570_s24  ;;  %v1047_v61 = vpop.permute.xlu0 %1046 }
0x10b8   :  { %v1049_v62 = vmul.f32 %v1047_v61, %v1040_v58 }
0x10ba   :  { %1051 = vrot.lane.b32.xlu0 %v1049_v62, %s1570_s24 }
0x1129   :  { %v1022_v1 = vpop.permute.xlu1 %1021 }
0x112a   :  { %v1024_v2 = vadd.f32 %v1022_v1, %v1014_v63 }
0x112c   :  { %1534 = vtanh.f32 %v1024_v2  ;;  %v1052_v5 = vpop.permute.xlu0 %1051 }
0x112d   :  { %v1054_v7 = vadd.f32 %v1052_v5, %v1044_v4 }
0x112f   :  { %1536 = vtanh.f32 %v1054_v7 }
0x1136   :  { %v1535_v21 = vpop.eup %1534 }
0x1137   :  { %1027 = vrot.lane.b32.xlu1 %v1535_v21, %s1569_s21 }
0x1139   :  { %v1537_v8 = vpop.eup %1536 }
0x113a   :  { %1057 = vrot.lane.b32.xlu0 %v1537_v8, %s1569_s21 }
0x11a9   :  { %v1028_v9 = vpop.permute.xlu1 %1027 }
0x11aa   :  { %v1030_v24 = vmul.f32 %v1028_v9, %v1013_v57 }
0x11ac   :  { %v1066_v30 = vrot.slane %v1030_v24, 6  ;;  %v1058_v33 = vpop.permute.xlu0 %1057 }
0x11ad   :  { %v1060_v39 = vmul.f32 %v1058_v33, %v1040_v58 }
0x11ae   :  { %1067 = vrot.lane.b32.xlu0 %v1066_v30, %s1569_s21 }
0x11af   :  { %1062 = vrot.lane.b32.xlu1 %v1060_v39, %s1570_s24 }
0x1220   :  { %v1068_v43 = vpop.permute.xlu0 %1067 }
0x1221   :  { %v1063_v48 = vpop.permute.xlu1 %1062 }
0x1222   :  { %v1070_v10 = vsel %vm270_vm10, %v1063_v48, %v1068_v43 }
0x1223   :  { %v1072_v11 = vrot.slane %v1070_v10, 2 }
0x1225   :  { %1281 = vmatmul.mubr.msk.f32.vlgmr.msra.gmra.mrb[8].mxu0 %vm156_vm9, %v1072_v11 }
0x12f8   :  { %v1141_v12 = vpop.f32.mrb[8].mxu0 }
0x12f9   :  { %v1145_v13 = vadd.f32 %v1141_v12, %v1794_v50  ;;  %v1143_v14 = vpop.f32.mrb[9].mxu0 }
0x12fb   :  { %v1146_v15 = vmul.f32 0.5, %v1145_v13 }
0x12fd   :  { %v1147_v16 = vsel %vm1768_vm13, %v1145_v13, %v1146_v15 }
0x12fe   :  { %1538 = vtanh.f32 %v1147_v16 }
0x1308   :  { %v1539_v18 = vpop.eup %1538 }
0x1309   :  { %v1149_v20 = vmul.f32 0.5, %v1539_v18 }
0x130b   :  { %v1150_v23 = vadd.f32 0.5, %v1149_v20 }
0x130d   :  { %v1151_v25 = vsel %vm1768_vm13, %v1539_v18, %v1150_v23 }
0x130e   :  { %1154 = vrot.lane.b32.xlu1 %v1151_v25, %s1569_s21  ;;  %v1152_v29 = vmul.f32 %v1151_v25, %v1024_v2 }
0x1380   :  { %v1155_v26 = vpop.permute.xlu1 %1154 }
0x1381   :  { %v1157_v28 = vmul.f32 %v1155_v26, %v1151_v25 }
0x1383   :  { %1159 = vrot.lane.b32.xlu0 %v1157_v28, %s1570_s24 }
0x13f5   :  { %v1160_v50 = vpop.permute.xlu0 %1159 }
0x13f6   :  { %v1162_v31 = vadd.f32 %v1160_v50, %v1152_v29 }
0x13f8   :  { %1540 = vtanh.f32 %v1162_v31 }
0x1402   :  { %v1541_v38 = vpop.eup %1540 }
0x1403   :  { %1165 = vrot.lane.b32.xlu1 %v1541_v38, %s1569_s21 }
0x1475   :  { %v1166_v40 = vpop.permute.xlu1 %1165 }
0x1476   :  { %v1168_v41 = vmul.f32 %v1166_v40, %v1151_v25 }
0x1478   :  { %1179 = vrot.lane.b32.xlu0 %v1168_v41, %s1570_s24 }
0x14ea   :  { %v1180_v22 = vpop.permute.xlu0 %1179 }
0x14eb   :  { %1346 = vmatmul.mubr.msk.f32.vlgmr.msra.gmra.mrb[8].mxu1 %vm270_vm10, %v1180_v22 }
0x15be   :  { %v1249_v44 = vpop.f32.mrb[8].mxu1 }
0x15bf   :  { %v1250_v3 = vadd.f32 %v1282_v42, %v1249_v44  ;;  %v1347_v45 = vpop.f32.mrb[9].mxu1 }
0x15c1   :  { %1254 = vst.msk [vmem:[#allocation2] sm:$0x3] %vm1253_vm14, %v1250_v3 }
0x15c2   :  { %1553 = shalt.err (!%p1550_p4)
}
0x15c3   :  { %s1554_s21 = scalar_lea.hbm %s1970_s4, 32 }
0x15c4   :  { %p1555_p5 = scmp.ne.s32.totalorder %s1970_s4, %s1554_s21  ;;  %p1558_p6 = scmp.lt.u32.totalorder %s1554_s21, %s1970_s4 }
0x15c6   :  { %p1560_p7 = pnand %p1558_p6, %p1555_p5 }
0x15c8   :  { %1563 = shalt.err (!%p1560_p7)
}
0x15c9   :  { %1264 = dma.vmem_to_hbm [thread:$0]  %s1262_s17, 32, %s1970_s4, [#allocation3]  }
0x15ca   :  { %1564 = dma.done.wait [#allocation3], 32  }
0x15cb   :  { %1565 = vsyncadd [#allocation3], 4294967264 }
0x15cc   :  { %1268 = vsyncpa [#allocation3], 1 }

</bundles_post_ra>
